<compile_context>
chip_gen: v7x
topology: tpu7x:2x2x1
jax: 0.10.0
libtpu: 0.0.40
codegen_flags: <defaults>
</compile_context>

<pallas_src>
import jax
import jax.numpy as jnp
from jax.experimental import pallas as pl
from jax.experimental.pallas import tpu as pltpu


def _fused_block_kernel(x_ref, w1_ref, b1_ref, w2_ref, b2_ref, o_ref, pad_ref):
    # x_ref   : (bb, H, W, C)      input block (NHWC)
    # w1_ref  : (9*C, C)           conv1 weights, im2col layout (tap-major)
    # b1_ref  : (1, C)
    # w2_ref  : (9*C, C)           conv2 weights, im2col layout
    # b2_ref  : (1, C)
    # o_ref   : (bb, H, W, C)
    # pad_ref : (bb, H+2, W+2, C)  zero-padded activation scratch (VMEM)
    bb, hp, wp, c = pad_ref.shape
    h, w = hp - 2, wp - 2
    m = bb * h * w

    def im2col():
        # 9 static tap views of the padded scratch -> one (M, 9*C) matrix.
        taps = []
        for kh in range(3):
            for kw in range(3):
                taps.append(pad_ref[:, kh:kh + h, kw:kw + w, :].reshape(m, c))
        return jnp.concatenate(taps, axis=-1)

    # ---- conv1 + ReLU ---------------------------------------------------
    pad_ref[...] = jnp.zeros_like(pad_ref)           # in-kernel zero padding
    pad_ref[:, 1:h + 1, 1:w + 1, :] = x_ref[...].astype(jnp.float32)
    y = jnp.dot(im2col(), w1_ref[...], preferred_element_type=jnp.float32)
    y = jnp.maximum(y + b1_ref[...], 0.0)

    # ---- conv2 + LeakyReLU(0.01, PyTorch default) -----------------------
    # Borders of pad_ref are still zero; overwrite only the interior.
    pad_ref[:, 1:h + 1, 1:w + 1, :] = y.reshape(bb, h, w, c)
    z = jnp.dot(im2col(), w2_ref[...], preferred_element_type=jnp.float32)
    z = z + b2_ref[...]
    z = jnp.where(z >= 0.0, z, 0.01 * z)

    o_ref[...] = z.reshape(bb, h, w, c).astype(o_ref.dtype)


def _pick_batch_block(n, hw, max_rows=512):
    # Largest batch sub-block dividing n with bb*H*W rows kept moderate:
    # >=128 fills MXU rows, <=512 keeps the f32 im2col value / padded scratch
    # comfortably inside VMEM / vreg pressure limits.
    for bb in range(n, 0, -1):
        if n % bb == 0 and bb * hw <= max_rows:
            return bb
    return 1


def main_extraction_block_nhwc(x_nhwc, params):
    """Fused forward pass on NHWC input; returns NHWC output."""
    n, h, w, cin = x_nhwc.shape
    cout = params["w1"].shape[-1]
    assert cin == cout, "MainExtractionBlock is 64->64 (padded scratch reused)"

    # HWIO (3,3,Cin,Cout) -> im2col layout (9*Cin, Cout), tap-major rows.
    w1c = params["w1"].reshape(9 * cin, cout)
    w2c = params["w2"].reshape(9 * cout, cout)
    b1 = params["b1"].reshape(1, cout)
    b2 = params["b2"].reshape(1, cout)

    bb = _pick_batch_block(n, h * w)

    return pl.pallas_call(
        _fused_block_kernel,
        out_shape=jax.ShapeDtypeStruct((n, h, w, cout), x_nhwc.dtype),
        grid_spec=pltpu.PrefetchScalarGridSpec(
            num_scalar_prefetch=0,
            grid=(n // bb,),
            in_specs=[
                pl.BlockSpec((bb, h, w, cin), lambda i: (i, 0, 0, 0)),
                pl.BlockSpec((9 * cin, cout), lambda i: (0, 0)),
                pl.BlockSpec((1, cout), lambda i: (0, 0)),
                pl.BlockSpec((9 * cout, cout), lambda i: (0, 0)),
                pl.BlockSpec((1, cout), lambda i: (0, 0)),
            ],
            out_specs=pl.BlockSpec((bb, h, w, cout), lambda i: (i, 0, 0, 0)),
            scratch_shapes=[
                pltpu.VMEM((bb, h + 2, w + 2, cin), jnp.float32),  # padded act
            ],
        ),
        compiler_params=pltpu.CompilerParams(
            dimension_semantics=("parallel",)),
    )(x_nhwc, w1c, b1, w2c, b2)


def main_extraction_block(x_nchw, params):
    """PyTorch-compatible NCHW interface around the NHWC fused kernel."""
    x = jnp.transpose(x_nchw, (0, 2, 3, 1))   # NCHW -> NHWC (interface only)
    y = main_extraction_block_nhwc(x, params)
    return jnp.transpose(y, (0, 3, 1, 2))     # NHWC -> NCHW


def init_params(key, cin=64, cout=64):
    # Deterministic init mimicking PyTorch Conv2d default (U(+/- 1/sqrt(fan_in))).
    k1, k2, k3, k4 = jax.random.split(key, 4)
    fan_in = cin * 3 * 3
    bound = 1.0 / jnp.sqrt(fan_in)
    w1 = jax.random.uniform(k1, (3, 3, cin, cout), jnp.float32, -bound, bound)
    b1 = jax.random.uniform(k2, (cout,), jnp.float32, -bound, bound)
    w2 = jax.random.uniform(k3, (3, 3, cout, cout), jnp.float32, -bound, bound)
    b2 = jax.random.uniform(k4, (cout,), jnp.float32, -bound, bound)
    return {"w1": w1, "b1": b1, "w2": w2, "b2": b2}


def _reference(x_nchw, params):
    # Pure-JAX reference (XLA conv) for correctness check.
    def conv(x, w_hwio, b):
        y = jax.lax.conv_general_dilated(
            x, w_hwio, window_strides=(1, 1), padding="SAME",
            dimension_numbers=("NHWC", "HWIO", "NHWC"))
        return y + b[None, None, None, :]

    x = jnp.transpose(x_nchw, (0, 2, 3, 1))
    x = jnp.maximum(conv(x, params["w1"], params["b1"]), 0.0)
    y = conv(x, params["w2"], params["b2"])
    x = jnp.where(y >= 0.0, y, 0.01 * y)
    return jnp.transpose(x, (0, 3, 1, 2))


if __name__ == "__main__":
    key = jax.random.PRNGKey(0)
    kx, kp = jax.random.split(key)

    # Module requires 64 input channels; keep batch/spatial small.
    N, C, H, W = 2, 64, 8, 8
    x = jax.random.normal(kx, (N, C, H, W), jnp.float32)
    params = init_params(kp, cin=C, cout=64)

    out = jax.block_until_ready(main_extraction_block(x, params))
    ref = jax.block_until_ready(_reference(x, params))

    assert out.shape == (N, 64, H, W)
    assert jnp.allclose(out, ref, atol=1e-3, rtol=1e-3), \
        float(jnp.max(jnp.abs(out - ref)))

    print("KERNEL_OK")
</pallas_src>

<mosaic_0001>
module attributes {stable_mosaic.version = 11 : i64} {
  func.func @_fused_block_kernel(%arg0: i32, %arg1: memref<2x8x8x64xf32, #tpu.memory_space<vmem>>, %arg2: memref<576x64xf32, #tpu.memory_space<vmem>>, %arg3: memref<1x64xf32, #tpu.memory_space<vmem>>, %arg4: memref<576x64xf32, #tpu.memory_space<vmem>>, %arg5: memref<1x64xf32, #tpu.memory_space<vmem>>, %arg6: memref<2x8x8x64xf32, #tpu.memory_space<vmem>>, %arg7: memref<2x10x10x64xf32, #tpu.memory_space<vmem>>) attributes {dimension_semantics = [#tpu.dimension_semantics<parallel>], iteration_bounds = array<i64: 1>, scalar_prefetch = 0 : i64, scratch_operands = 1 : i64, tpu.core_type = #tpu.core_type<tc>, window_params = [{transform_indices = @transform_0, window_bounds = array<i64: 2, 8, 8, 64>}, {pipeline_mode = #tpu.pipeline_mode<synchronous>, transform_indices = @transform_1, window_bounds = array<i64: 576, 64>}, {pipeline_mode = #tpu.pipeline_mode<synchronous>, transform_indices = @transform_2, window_bounds = array<i64: 1, 64>}, {pipeline_mode = #tpu.pipeline_mode<synchronous>, transform_indices = @transform_3, window_bounds = array<i64: 576, 64>}, {pipeline_mode = #tpu.pipeline_mode<synchronous>, transform_indices = @transform_4, window_bounds = array<i64: 1, 64>}, {transform_indices = @transform_5, window_bounds = array<i64: 2, 8, 8, 64>}]} {
    %cst = arith.constant 0.000000e+00 : f32
    %0 = vector.broadcast %cst : f32 to vector<2x10x10x64xf32>
    %c0 = arith.constant 0 : index
    %c0_0 = arith.constant 0 : index
    %c0_1 = arith.constant 0 : index
    %c0_2 = arith.constant 0 : index
    %1 = vector.load %arg7[%c0, %c0_0, %c0_1, %c0_2] : memref<2x10x10x64xf32, #tpu.memory_space<vmem>>, vector<2x10x10x64xf32>
    tpu.vector_store %arg7[%c0, %c0_0, %c0_1, %c0_2], %0 {strides = array<i32>} : memref<2x10x10x64xf32, #tpu.memory_space<vmem>>, vector<2x10x10x64xf32>,
    %c0_3 = arith.constant 0 : index
    %c0_4 = arith.constant 0 : index
    %c0_5 = arith.constant 0 : index
    %c0_6 = arith.constant 0 : index
    %2 = vector.load %arg1[%c0_3, %c0_4, %c0_5, %c0_6] : memref<2x8x8x64xf32, #tpu.memory_space<vmem>>, vector<2x8x8x64xf32>
    %c0_7 = arith.constant 0 : index
    %c1 = arith.constant 1 : index
    %c1_8 = arith.constant 1 : index
    %c0_9 = arith.constant 0 : index
    %3 = vector.load %arg7[%c0_7, %c1, %c1_8, %c0_9] : memref<2x10x10x64xf32, #tpu.memory_space<vmem>>, vector<2x8x8x64xf32>
    tpu.vector_store %arg7[%c0_7, %c1, %c1_8, %c0_9], %2 {strides = array<i32>} : memref<2x10x10x64xf32, #tpu.memory_space<vmem>>, vector<2x8x8x64xf32>,
    %c0_10 = arith.constant 0 : index
    %c0_11 = arith.constant 0 : index
    %c0_12 = arith.constant 0 : index
    %c0_13 = arith.constant 0 : index
    %4 = vector.load %arg7[%c0_10, %c0_11, %c0_12, %c0_13] : memref<2x10x10x64xf32, #tpu.memory_space<vmem>>, vector<2x8x8x64xf32>
    %5 = vector.shape_cast %4 : vector<2x8x8x64xf32> to vector<128x64xf32>
    %c0_14 = arith.constant 0 : index
    %c0_15 = arith.constant 0 : index
    %c1_16 = arith.constant 1 : index
    %c0_17 = arith.constant 0 : index
    %6 = vector.load %arg7[%c0_14, %c0_15, %c1_16, %c0_17] : memref<2x10x10x64xf32, #tpu.memory_space<vmem>>, vector<2x8x8x64xf32>
    %7 = vector.shape_cast %6 : vector<2x8x8x64xf32> to vector<128x64xf32>
    %c0_18 = arith.constant 0 : index
    %c0_19 = arith.constant 0 : index
    %c2 = arith.constant 2 : index
    %c0_20 = arith.constant 0 : index
    %8 = vector.load %arg7[%c0_18, %c0_19, %c2, %c0_20] : memref<2x10x10x64xf32, #tpu.memory_space<vmem>>, vector<2x8x8x64xf32>
    %9 = vector.shape_cast %8 : vector<2x8x8x64xf32> to vector<128x64xf32>
    %c0_21 = arith.constant 0 : index
    %c1_22 = arith.constant 1 : index
    %c0_23 = arith.constant 0 : index
    %c0_24 = arith.constant 0 : index
    %10 = vector.load %arg7[%c0_21, %c1_22, %c0_23, %c0_24] : memref<2x10x10x64xf32, #tpu.memory_space<vmem>>, vector<2x8x8x64xf32>
    %11 = vector.shape_cast %10 : vector<2x8x8x64xf32> to vector<128x64xf32>
    %c0_25 = arith.constant 0 : index
    %c1_26 = arith.constant 1 : index
    %c1_27 = arith.constant 1 : index
    %c0_28 = arith.constant 0 : index
    %12 = vector.load %arg7[%c0_25, %c1_26, %c1_27, %c0_28] : memref<2x10x10x64xf32, #tpu.memory_space<vmem>>, vector<2x8x8x64xf32>
    %13 = vector.shape_cast %12 : vector<2x8x8x64xf32> to vector<128x64xf32>
    %c0_29 = arith.constant 0 : index
    %c1_30 = arith.constant 1 : index
    %c2_31 = arith.constant 2 : index
    %c0_32 = arith.constant 0 : index
    %14 = vector.load %arg7[%c0_29, %c1_30, %c2_31, %c0_32] : memref<2x10x10x64xf32, #tpu.memory_space<vmem>>, vector<2x8x8x64xf32>
    %15 = vector.shape_cast %14 : vector<2x8x8x64xf32> to vector<128x64xf32>
    %c0_33 = arith.constant 0 : index
    %c2_34 = arith.constant 2 : index
    %c0_35 = arith.constant 0 : index
    %c0_36 = arith.constant 0 : index
    %16 = vector.load %arg7[%c0_33, %c2_34, %c0_35, %c0_36] : memref<2x10x10x64xf32, #tpu.memory_space<vmem>>, vector<2x8x8x64xf32>
    %17 = vector.shape_cast %16 : vector<2x8x8x64xf32> to vector<128x64xf32>
    %c0_37 = arith.constant 0 : index
    %c2_38 = arith.constant 2 : index
    %c1_39 = arith.constant 1 : index
    %c0_40 = arith.constant 0 : index
    %18 = vector.load %arg7[%c0_37, %c2_38, %c1_39, %c0_40] : memref<2x10x10x64xf32, #tpu.memory_space<vmem>>, vector<2x8x8x64xf32>
    %19 = vector.shape_cast %18 : vector<2x8x8x64xf32> to vector<128x64xf32>
    %c0_41 = arith.constant 0 : index
    %c2_42 = arith.constant 2 : index
    %c2_43 = arith.constant 2 : index
    %c0_44 = arith.constant 0 : index
    %20 = vector.load %arg7[%c0_41, %c2_42, %c2_43, %c0_44] : memref<2x10x10x64xf32, #tpu.memory_space<vmem>>, vector<2x8x8x64xf32>
    %21 = vector.shape_cast %20 : vector<2x8x8x64xf32> to vector<128x64xf32>
    %22 = tpu.concatenate %5, %7, %9, %11, %13, %15, %17, %19, %21 in 1 : vector<128x64xf32>, vector<128x64xf32>, vector<128x64xf32>, vector<128x64xf32>, vector<128x64xf32>, vector<128x64xf32>, vector<128x64xf32>, vector<128x64xf32>, vector<128x64xf32> -> vector<128x576xf32>
    %c0_45 = arith.constant 0 : index
    %c0_46 = arith.constant 0 : index
    %23 = vector.load %arg2[%c0_45, %c0_46] : memref<576x64xf32, #tpu.memory_space<vmem>>, vector<576x64xf32>
    %cst_47 = arith.constant dense<0.000000e+00> : vector<128x64xf32>
    %24 = tpu.matmul %22, %23, %cst_47 {dimension_numbers = #tpu.dot_dimension_numbers<[1], [0], [0], [1], [0, 0, 1, 1], [], []>} : vector<128x576xf32>, vector<576x64xf32>, vector<128x64xf32> -> vector<128x64xf32>
    %c0_48 = arith.constant 0 : index
    %c0_49 = arith.constant 0 : index
    %25 = vector.load %arg3[%c0_48, %c0_49] : memref<1x64xf32, #tpu.memory_space<vmem>>, vector<1x64xf32>
    %26 = vector.broadcast %25 : vector<1x64xf32> to vector<128x64xf32>
    %27 = arith.addf %24, %26 : vector<128x64xf32>
    %cst_50 = arith.constant 0.000000e+00 : f32
    %28 = vector.broadcast %cst_50 : f32 to vector<128x64xf32>
    %29 = arith.maximumf %27, %28 : vector<128x64xf32>
    %30 = vector.shape_cast %29 : vector<128x64xf32> to vector<2x8x8x64xf32>
    %c0_51 = arith.constant 0 : index
    %c1_52 = arith.constant 1 : index
    %c1_53 = arith.constant 1 : index
    %c0_54 = arith.constant 0 : index
    %31 = vector.load %arg7[%c0_51, %c1_52, %c1_53, %c0_54] : memref<2x10x10x64xf32, #tpu.memory_space<vmem>>, vector<2x8x8x64xf32>
    tpu.vector_store %arg7[%c0_51, %c1_52, %c1_53, %c0_54], %30 {strides = array<i32>} : memref<2x10x10x64xf32, #tpu.memory_space<vmem>>, vector<2x8x8x64xf32>,
    %c0_55 = arith.constant 0 : index
    %c0_56 = arith.constant 0 : index
    %c0_57 = arith.constant 0 : index
    %c0_58 = arith.constant 0 : index
    %32 = vector.load %arg7[%c0_55, %c0_56, %c0_57, %c0_58] : memref<2x10x10x64xf32, #tpu.memory_space<vmem>>, vector<2x8x8x64xf32>
    %33 = vector.shape_cast %32 : vector<2x8x8x64xf32> to vector<128x64xf32>
    %c0_59 = arith.constant 0 : index
    %c0_60 = arith.constant 0 : index
    %c1_61 = arith.constant 1 : index
    %c0_62 = arith.constant 0 : index
    %34 = vector.load %arg7[%c0_59, %c0_60, %c1_61, %c0_62] : memref<2x10x10x64xf32, #tpu.memory_space<vmem>>, vector<2x8x8x64xf32>
    %35 = vector.shape_cast %34 : vector<2x8x8x64xf32> to vector<128x64xf32>
    %c0_63 = arith.constant 0 : index
    %c0_64 = arith.constant 0 : index
    %c2_65 = arith.constant 2 : index
    %c0_66 = arith.constant 0 : index
    %36 = vector.load %arg7[%c0_63, %c0_64, %c2_65, %c0_66] : memref<2x10x10x64xf32, #tpu.memory_space<vmem>>, vector<2x8x8x64xf32>
    %37 = vector.shape_cast %36 : vector<2x8x8x64xf32> to vector<128x64xf32>
    %c0_67 = arith.constant 0 : index
    %c1_68 = arith.constant 1 : index
    %c0_69 = arith.constant 0 : index
    %c0_70 = arith.constant 0 : index
    %38 = vector.load %arg7[%c0_67, %c1_68, %c0_69, %c0_70] : memref<2x10x10x64xf32, #tpu.memory_space<vmem>>, vector<2x8x8x64xf32>
    %39 = vector.shape_cast %38 : vector<2x8x8x64xf32> to vector<128x64xf32>
    %c0_71 = arith.constant 0 : index
    %c1_72 = arith.constant 1 : index
    %c1_73 = arith.constant 1 : index
    %c0_74 = arith.constant 0 : index
    %40 = vector.load %arg7[%c0_71, %c1_72, %c1_73, %c0_74] : memref<2x10x10x64xf32, #tpu.memory_space<vmem>>, vector<2x8x8x64xf32>
    %41 = vector.shape_cast %40 : vector<2x8x8x64xf32> to vector<128x64xf32>
    %c0_75 = arith.constant 0 : index
    %c1_76 = arith.constant 1 : index
    %c2_77 = arith.constant 2 : index
    %c0_78 = arith.constant 0 : index
    %42 = vector.load %arg7[%c0_75, %c1_76, %c2_77, %c0_78] : memref<2x10x10x64xf32, #tpu.memory_space<vmem>>, vector<2x8x8x64xf32>
    %43 = vector.shape_cast %42 : vector<2x8x8x64xf32> to vector<128x64xf32>
    %c0_79 = arith.constant 0 : index
    %c2_80 = arith.constant 2 : index
    %c0_81 = arith.constant 0 : index
    %c0_82 = arith.constant 0 : index
    %44 = vector.load %arg7[%c0_79, %c2_80, %c0_81, %c0_82] : memref<2x10x10x64xf32, #tpu.memory_space<vmem>>, vector<2x8x8x64xf32>
    %45 = vector.shape_cast %44 : vector<2x8x8x64xf32> to vector<128x64xf32>
    %c0_83 = arith.constant 0 : index
    %c2_84 = arith.constant 2 : index
    %c1_85 = arith.constant 1 : index
    %c0_86 = arith.constant 0 : index
    %46 = vector.load %arg7[%c0_83, %c2_84, %c1_85, %c0_86] : memref<2x10x10x64xf32, #tpu.memory_space<vmem>>, vector<2x8x8x64xf32>
    %47 = vector.shape_cast %46 : vector<2x8x8x64xf32> to vector<128x64xf32>
    %c0_87 = arith.constant 0 : index
    %c2_88 = arith.constant 2 : index
    %c2_89 = arith.constant 2 : index
    %c0_90 = arith.constant 0 : index
    %48 = vector.load %arg7[%c0_87, %c2_88, %c2_89, %c0_90] : memref<2x10x10x64xf32, #tpu.memory_space<vmem>>, vector<2x8x8x64xf32>
    %49 = vector.shape_cast %48 : vector<2x8x8x64xf32> to vector<128x64xf32>
    %50 = tpu.concatenate %33, %35, %37, %39, %41, %43, %45, %47, %49 in 1 : vector<128x64xf32>, vector<128x64xf32>, vector<128x64xf32>, vector<128x64xf32>, vector<128x64xf32>, vector<128x64xf32>, vector<128x64xf32>, vector<128x64xf32>, vector<128x64xf32> -> vector<128x576xf32>
    %c0_91 = arith.constant 0 : index
    %c0_92 = arith.constant 0 : index
    %51 = vector.load %arg4[%c0_91, %c0_92] : memref<576x64xf32, #tpu.memory_space<vmem>>, vector<576x64xf32>
    %cst_93 = arith.constant dense<0.000000e+00> : vector<128x64xf32>
    %52 = tpu.matmul %50, %51, %cst_93 {dimension_numbers = #tpu.dot_dimension_numbers<[1], [0], [0], [1], [0, 0, 1, 1], [], []>} : vector<128x576xf32>, vector<576x64xf32>, vector<128x64xf32> -> vector<128x64xf32>
    %c0_94 = arith.constant 0 : index
    %c0_95 = arith.constant 0 : index
    %53 = vector.load %arg5[%c0_94, %c0_95] : memref<1x64xf32, #tpu.memory_space<vmem>>, vector<1x64xf32>
    %54 = vector.broadcast %53 : vector<1x64xf32> to vector<128x64xf32>
    %55 = arith.addf %52, %54 : vector<128x64xf32>
    %cst_96 = arith.constant 0.000000e+00 : f32
    %56 = vector.broadcast %cst_96 : f32 to vector<128x64xf32>
    %57 = arith.cmpf oge, %55, %56 : vector<128x64xf32>
    %cst_97 = arith.constant 0.00999999977 : f32
    %58 = vector.broadcast %cst_97 : f32 to vector<128x64xf32>
    %59 = arith.mulf %58, %55 : vector<128x64xf32>
    %60 = arith.select %57, %55, %59 : vector<128x64xi1>, vector<128x64xf32>
    %61 = vector.shape_cast %60 : vector<128x64xf32> to vector<2x8x8x64xf32>
    %c0_98 = arith.constant 0 : index
    %c0_99 = arith.constant 0 : index
    %c0_100 = arith.constant 0 : index
    %c0_101 = arith.constant 0 : index
    %62 = vector.load %arg6[%c0_98, %c0_99, %c0_100, %c0_101] : memref<2x8x8x64xf32, #tpu.memory_space<vmem>>, vector<2x8x8x64xf32>
    tpu.vector_store %arg6[%c0_98, %c0_99, %c0_100, %c0_101], %61 {strides = array<i32>} : memref<2x8x8x64xf32, #tpu.memory_space<vmem>>, vector<2x8x8x64xf32>,
    return
  }
  func.func @transform_0(%arg0: i32) -> (i32, i32, i32, i32) {
    %c0_i32 = arith.constant 0 : i32
    %c0_i32_0 = arith.constant 0 : i32
    %c0_i32_1 = arith.constant 0 : i32
    %c0_i32_2 = arith.constant 0 : i32
    return %arg0, %c0_i32, %c0_i32_0, %c0_i32_1 : i32, i32, i32, i32
  }
  func.func @transform_1(%arg0: i32) -> (i32, i32) {
    %c0_i32 = arith.constant 0 : i32
    %c0_i32_0 = arith.constant 0 : i32
    %c0_i32_1 = arith.constant 0 : i32
    return %c0_i32, %c0_i32_0 : i32, i32
  }
  func.func @transform_2(%arg0: i32) -> (i32, i32) {
    %c0_i32 = arith.constant 0 : i32
    %c0_i32_0 = arith.constant 0 : i32
    %c0_i32_1 = arith.constant 0 : i32
    return %c0_i32, %c0_i32_0 : i32, i32
  }
  func.func @transform_3(%arg0: i32) -> (i32, i32) {
    %c0_i32 = arith.constant 0 : i32
    %c0_i32_0 = arith.constant 0 : i32
    %c0_i32_1 = arith.constant 0 : i32
    return %c0_i32, %c0_i32_0 : i32, i32
  }
  func.func @transform_4(%arg0: i32) -> (i32, i32) {
    %c0_i32 = arith.constant 0 : i32
    %c0_i32_0 = arith.constant 0 : i32
    %c0_i32_1 = arith.constant 0 : i32
    return %c0_i32, %c0_i32_0 : i32, i32
  }
  func.func @transform_5(%arg0: i32) -> (i32, i32, i32, i32) {
    %c0_i32 = arith.constant 0 : i32
    %c0_i32_0 = arith.constant 0 : i32
    %c0_i32_1 = arith.constant 0 : i32
    %c0_i32_2 = arith.constant 0 : i32
    return %arg0, %c0_i32, %c0_i32_0, %c0_i32_1 : i32, i32, i32, i32
  }
}

</mosaic_0001>

<bundles_post_ra>
// kernel: tpu_custom_call.1
= control target key start
LH: loop header
LB: loop body
LE: loop exit
PB: predicated region body
PF: predicated region fallthrough
CT: control target
= control target key end

     0   :  { %vm21_vm0 = vcmask 523264   ;;  %vm23_vm1 = vcmask 517120   ;;  %v3252_v2 = vmov 0.0   ;;  %s3253_s11 = smov 64   ;;  %s4789_s0 = inlined_call_operand.vmem [shape: f32[2,8,8,64], index: 0, kind: input, shape index: {}]   ;;  %s4790_s1 = inlined_call_operand.vmem [shape: f32[576,64], index: 1, kind: input, shape index: {}]   ;;  %s4791_s2 = inlined_call_operand.vmem [shape: f32[1,64], index: 2, kind: input, shape index: {}]   ;;  %s4792_s3 = inlined_call_operand.vmem [shape: f32[576,64], index: 3, kind: input, shape index: {}]   ;;  %s4793_s4 = inlined_call_operand.vmem [shape: f32[1,64], index: 4, kind: input, shape index: {}]   ;;  %s4794_s5 = inlined_call_operand.hbm [shape: f32[2,8,8,64], index: 5, kind: output, shape index: {}]  }
   0x1   :  { %v63_v0 = vld [vmem:[%s4789_s0] sm:$0xff]  ;;  %v64_v1 = vld [vmem:[%s4789_s0 + $0x8] sm:$0xff]  ;;  %22 = vst.msk [vmem:[#allocation2] sm:$0xff] %vm21_vm0, %v3252_v2  ;;  %25 = vst.msk [vmem:[#allocation2 + $0x10] sm:$0xff] %vm21_vm0, %v3252_v2 }
   0x2   :  { %24 = vst.msk [vmem:[#allocation2 + $0x8] sm:$0x3] %vm23_vm1, %v3252_v2  ;;  %26 = vst.msk [vmem:[#allocation2 + $0x18] sm:$0x3] %vm23_vm1, %v3252_v2  ;;  %v65_v3 = vld [vmem:[%s4789_s0 + $0x10] sm:$0xff]  ;;  %v66_v4 = vld [vmem:[%s4789_s0 + $0x18] sm:$0xff] }
   0x3   :  { %27 = vst.msk [vmem:[#allocation2 + $0x20] sm:$0xff] %vm21_vm0, %v3252_v2  ;;  %29 = vst.msk [vmem:[#allocation2 + $0x30] sm:$0xff] %vm21_vm0, %v3252_v2  ;;  %v67_v5 = vld [vmem:[%s4789_s0 + $0x20] sm:$0xff]  ;;  %v68_v6 = vld [vmem:[%s4789_s0 + $0x28] sm:$0xff] }
   0x4   :  { %28 = vst.msk [vmem:[#allocation2 + $0x28] sm:$0x3] %vm23_vm1, %v3252_v2  ;;  %30 = vst.msk [vmem:[#allocation2 + $0x38] sm:$0x3] %vm23_vm1, %v3252_v2  ;;  %v69_v7 = vld [vmem:[%s4789_s0 + $0x30] sm:$0xff]  ;;  %v70_v8 = vld [vmem:[%s4789_s0 + $0x38] sm:$0xff] }
   0x5   :  { %31 = vst.msk [vmem:[#allocation2 + $0x40] sm:$0xff] %vm21_vm0, %v3252_v2  ;;  %33 = vst.msk [vmem:[#allocation2 + $0x50] sm:$0xff] %vm21_vm0, %v3252_v2  ;;  %v71_v9 = vld [vmem:[%s4789_s0 + $0x40] sm:$0xff]  ;;  %v72_v10 = vld [vmem:[%s4789_s0 + $0x48] sm:$0xff] }
   0x6   :  { %32 = vst.msk [vmem:[#allocation2 + $0x48] sm:$0x3] %vm23_vm1, %v3252_v2  ;;  %34 = vst.msk [vmem:[#allocation2 + $0x58] sm:$0x3] %vm23_vm1, %v3252_v2  ;;  %v73_v11 = vld [vmem:[%s4789_s0 + $0x50] sm:$0xff]  ;;  %v74_v12 = vld [vmem:[%s4789_s0 + $0x58] sm:$0xff] }
   0x7   :  { %35 = vst.msk [vmem:[#allocation2 + $0x60] sm:$0xff] %vm21_vm0, %v3252_v2  ;;  %37 = vst.msk [vmem:[#allocation2 + $0x70] sm:$0xff] %vm21_vm0, %v3252_v2  ;;  %v75_v13 = vld [vmem:[%s4789_s0 + $0x60] sm:$0xff]  ;;  %v76_v14 = vld [vmem:[%s4789_s0 + $0x68] sm:$0xff] }
   0x8   :  { %36 = vst.msk [vmem:[#allocation2 + $0x68] sm:$0x3] %vm23_vm1, %v3252_v2  ;;  %38 = vst.msk [vmem:[#allocation2 + $0x78] sm:$0x3] %vm23_vm1, %v3252_v2  ;;  %v77_v15 = vld [vmem:[%s4789_s0 + $0x70] sm:$0xff]  ;;  %v78_v16 = vld [vmem:[%s4789_s0 + $0x78] sm:$0xff] }
   0x9   :  { %39 = vst.msk [vmem:[#allocation2 + $0x80] sm:$0xff] %vm21_vm0, %v3252_v2  ;;  %41 = vst.msk [vmem:[#allocation2 + $0x90] sm:$0xff] %vm21_vm0, %v3252_v2  ;;  %v577_v17 = vld [vmem:[%s4790_s1 + $0x80] sm:$0xff]  ;;  %v578_v18 = vld [vmem:[%s4790_s1 + $0x88] sm:$0xff] }
   0xa   :  { %40 = vst.msk [vmem:[#allocation2 + $0x88] sm:$0x3] %vm23_vm1, %v3252_v2  ;;  %42 = vst.msk [vmem:[#allocation2 + $0x98] sm:$0x3] %vm23_vm1, %v3252_v2  ;;  %v561_v19 = vld [vmem:[%s4790_s1] sm:$0xff]  ;;  %v562_v20 = vld [vmem:[%s4790_s1 + $0x8] sm:$0xff]  ;;  %v2743_v21 = vpack.c.bf16 %v578_v18, %v577_v17 }
   0xb   :  { %43 = vst.msk [vmem:[#allocation2 + $0xa0] sm:$0xff] %vm21_vm0, %v3252_v2  ;;  %45 = vst.msk [vmem:[#allocation2 + $0xb0] sm:$0xff] %vm21_vm0, %v3252_v2  ;;  %v2745_v22 = vpack.c.bf16 %v562_v20, %v561_v19  ;;  %v579_v23 = vld [vmem:[%s4790_s1 + $0x90] sm:$0xff]  ;;  %v580_v24 = vld [vmem:[%s4790_s1 + $0x98] sm:$0xff] }
   0xc   :  { %44 = vst.msk [vmem:[#allocation2 + $0xa8] sm:$0x3] %vm23_vm1, %v3252_v2  ;;  %46 = vst.msk [vmem:[#allocation2 + $0xb8] sm:$0x3] %vm23_vm1, %v3252_v2  ;;  %v112_v25 = vld [vmem:[#allocation2 + $0x1] sm:$0xff]  ;;  %v2747_v26 = vpack.c.bf16 %v580_v24, %v579_v23  ;;  %2744 = vmatprep.subr.bf16.mxu0 %v2743_v21  ;;  %v563_v54 = vld [vmem:[%s4790_s1 + $0x10] sm:$0xff] }
   0xd   :  { %47 = vst.msk [vmem:[#allocation2 + $0xc0] sm:$0xff] %vm21_vm0, %v3252_v2  ;;  %49 = vst.msk [vmem:[#allocation2 + $0xd0] sm:$0xff] %vm21_vm0, %v3252_v2  ;;  %2746 = vmatpush3.bf16.msra.mxu0 %v2745_v22  ;;  %v564_v59 = vld [vmem:[%s4790_s1 + $0x18] sm:$0xff]  ;;  %v581_v63 = vld [vmem:[%s4790_s1 + $0xa0] sm:$0xff] }
   0xe   :  { %48 = vst.msk [vmem:[#allocation2 + $0xc8] sm:$0x3] %vm23_vm1, %v3252_v2  ;;  %50 = vst.msk [vmem:[#allocation2 + $0xd8] sm:$0x3] %vm23_vm1, %v3252_v2  ;;  %2748 = vmatprep.subr.bf16.mxu0 %v2747_v26  ;;  %v2749_v62 = vpack.c.bf16 %v564_v59, %v563_v54  ;;  %v586_v17 = vld [vmem:[%s4790_s1 + $0xc8] sm:$0xff]  ;;  %v569_v22 = vld [vmem:[%s4790_s1 + $0x40] sm:$0xff] }
   0xf   :  { %51 = vst.msk [vmem:[#allocation2 + $0xe0] sm:$0xff] %vm21_vm0, %v3252_v2  ;;  %53 = vst.msk [vmem:[#allocation2 + $0xf0] sm:$0xff] %vm21_vm0, %v3252_v2  ;;  %v570_v23 = vld [vmem:[%s4790_s1 + $0x48] sm:$0xff] }
  0x10   :  { %52 = vst.msk [vmem:[#allocation2 + $0xe8] sm:$0x3] %vm23_vm1, %v3252_v2  ;;  %54 = vst.msk [vmem:[#allocation2 + $0xf8] sm:$0x3] %vm23_vm1, %v3252_v2 }
  0x11   :  { %55 = vst.msk [vmem:[#allocation2 + $0x100] sm:$0xff] %vm21_vm0, %v3252_v2  ;;  %57 = vst.msk [vmem:[#allocation2 + $0x110] sm:$0xff] %vm21_vm0, %v3252_v2  ;;  %2750 = vmatpush3.bf16.msra.mxu0 %v2749_v62 }
  0x12   :  { %56 = vst.msk [vmem:[#allocation2 + $0x108] sm:$0x3] %vm23_vm1, %v3252_v2  ;;  %58 = vst.msk [vmem:[#allocation2 + $0x118] sm:$0x3] %vm23_vm1, %v3252_v2 }
  0x13   :  { %59 = vst.msk [vmem:[#allocation2 + $0x120] sm:$0xff] %vm21_vm0, %v3252_v2  ;;  %61 = vst.msk [vmem:[#allocation2 + $0x130] sm:$0xff] %vm21_vm0, %v3252_v2  ;;  %v120_v50 = vld [vmem:[#allocation2 + $0xa1] sm:$0xff] }
  0x14   :  { %60 = vst.msk [vmem:[#allocation2 + $0x128] sm:$0x3] %vm23_vm1, %v3252_v2  ;;  %62 = vst.msk [vmem:[#allocation2 + $0x138] sm:$0x3] %vm23_vm1, %v3252_v2  ;;  %v566_v2 = vld [vmem:[%s4790_s1 + $0x28] sm:$0xff] }
  0x15   :  { %80 = vst.msk [vmem:[#allocation2 + $0x11] sm:$0xff] %vm21_vm0, %v63_v0  ;;  %81 = vst.msk [vmem:[#allocation2 + $0x21] sm:$0xff] %vm21_vm0, %v64_v1  ;;  %v582_v0 = vld [vmem:[%s4790_s1 + $0xa8] sm:$0xff]  ;;  %v565_v1 = vld [vmem:[%s4790_s1 + $0x20] sm:$0xff] }
  0x16   :  { %82 = vst.msk [vmem:[#allocation2 + $0x31] sm:$0xff] %vm21_vm0, %v65_v3  ;;  %83 = vst.msk [vmem:[#allocation2 + $0x41] sm:$0xff] %vm21_vm0, %v66_v4  ;;  %v2751_v3 = vpack.c.bf16 %v582_v0, %v581_v63  ;;  %v2753_v4 = vpack.c.bf16 %v566_v2, %v565_v1  ;;  %v589_v63 = vld [vmem:[%s4790_s1 + $0xe0] sm:$0xff]  ;;  %v594_v0 = vld [vmem:[%s4790_s1 + $0x108] sm:$0xff] }
  0x17   :  { %84 = vst.msk [vmem:[#allocation2 + $0x51] sm:$0xff] %vm21_vm0, %v67_v5  ;;  %85 = vst.msk [vmem:[#allocation2 + $0x61] sm:$0xff] %vm21_vm0, %v68_v6  ;;  %v583_v5 = vld [vmem:[%s4790_s1 + $0xb0] sm:$0xff]  ;;  %v584_v6 = vld [vmem:[%s4790_s1 + $0xb8] sm:$0xff] }
  0x18   :  { %86 = vst.msk [vmem:[#allocation2 + $0x71] sm:$0xff] %vm21_vm0, %v69_v7  ;;  %87 = vst.msk [vmem:[#allocation2 + $0x81] sm:$0xff] %vm21_vm0, %v70_v8  ;;  %2752 = vmatprep.subr.bf16.mxu0 %v2751_v3  ;;  %v611_v1 = vld [vmem:[%s4790_s1 + $0x190] sm:$0xff] }
  0x19   :  { %88 = vst.msk [vmem:[#allocation2 + $0xb1] sm:$0xff] %vm21_vm0, %v71_v9  ;;  %89 = vst.msk [vmem:[#allocation2 + $0xc1] sm:$0xff] %vm21_vm0, %v72_v10  ;;  %v567_v10 = vld [vmem:[%s4790_s1 + $0x30] sm:$0xff]  ;;  %2754 = vmatpush3.bf16.msra.mxu0 %v2753_v4  ;;  %v612_v4 = vld [vmem:[%s4790_s1 + $0x198] sm:$0xff] }
  0x1a   :  { %90 = vst.msk [vmem:[#allocation2 + $0xd1] sm:$0xff] %vm21_vm0, %v73_v11  ;;  %91 = vst.msk [vmem:[#allocation2 + $0xe1] sm:$0xff] %vm21_vm0, %v74_v12  ;;  %v568_v11 = vld [vmem:[%s4790_s1 + $0x38] sm:$0xff] }
  0x1b   :  { %92 = vst.msk [vmem:[#allocation2 + $0xf1] sm:$0xff] %vm21_vm0, %v75_v13  ;;  %93 = vst.msk [vmem:[#allocation2 + $0x101] sm:$0xff] %vm21_vm0, %v76_v14  ;;  %v2757_v18 = vpack.c.bf16 %v568_v11, %v567_v10  ;;  %v613_v10 = vld [vmem:[%s4790_s1 + $0x1a0] sm:$0xff]  ;;  %v614_v11 = vld [vmem:[%s4790_s1 + $0x1a8] sm:$0xff] }
  0x1c   :  { %94 = vst.msk [vmem:[#allocation2 + $0x111] sm:$0xff] %vm21_vm0, %v77_v15  ;;  %95 = vst.msk [vmem:[#allocation2 + $0x121] sm:$0xff] %vm21_vm0, %v78_v16  ;;  %v3409_v27 = vld [vmem:[#allocation2 + $0x10] sm:$0xff]  ;;  %v3411_v28 = vld [vmem:[#allocation2 + $0x21] sm:$0xff]  ;;  %v2755_v15 = vpack.c.bf16 %v584_v6, %v583_v5 }
  0x1d   :  { %v3413_v29 = vld [vmem:[#allocation2 + $0x30] sm:$0xff]  ;;  %v2908_v30 = vpack.i.bf16 %v112_v25, %v3409_v27  ;;  %v3420_v33 = vld [vmem:[#allocation2 + $0x20] sm:$0xff]  ;;  %v596_v6 = vld [vmem:[%s4790_s1 + $0x118] sm:$0xff] }
  0x1e   :  { %v2918_v31 = vpack.i.bf16 %v3411_v28, %v3413_v29  ;;  %v3418_v32 = vld [vmem:[#allocation2 + $0x11] sm:$0xff]  ;;  %v3424_v35 = vld [vmem:[#allocation2 + $0x40] sm:$0xff]  ;;  %2756 = vmatprep.subr.bf16.mxu0 %v2755_v15 }
  0x1f   :  { %v3422_v34 = vld [vmem:[#allocation2 + $0x31] sm:$0xff]  ;;  %2909 = vrot.lane.b32.xlu0 %v2908_v30, %s3253_s11  ;;  %v2913_v36 = vpack.i.bf16 %v3418_v32, %v3420_v33  ;;  %v3432_v38 = vld [vmem:[#allocation2 + $0x41] sm:$0xff]  ;;  %2758 = vmatpush3.bf16.msra.mxu0 %v2757_v18 }
  0x20   :  { %2919 = vrot.lane.b32.xlu1 %v2918_v31, %s3253_s11  ;;  %v2923_v37 = vpack.i.bf16 %v3422_v34, %v3424_v35  ;;  %v3434_v39 = vld [vmem:[#allocation2 + $0x50] sm:$0xff]  ;;  %v3438_v41 = vld [vmem:[#allocation2 + $0x60] sm:$0xff]  ;;  %v588_v31 = vld [vmem:[%s4790_s1 + $0xd8] sm:$0xff] }
  0x21   :  { %v3436_v40 = vld [vmem:[#allocation2 + $0x51] sm:$0xff]  ;;  %v2928_v42 = vpack.i.bf16 %v3432_v38, %v3434_v39  ;;  %v3446_v44 = vld [vmem:[#allocation2 + $0x61] sm:$0xff] }
  0x22   :  { %v2933_v43 = vpack.i.bf16 %v3436_v40, %v3438_v41  ;;  %v3448_v45 = vld [vmem:[#allocation2 + $0x70] sm:$0xff]  ;;  %v3452_v47 = vld [vmem:[#allocation2 + $0x80] sm:$0xff] }
  0x23   :  { %2914 = vrot.lane.b32.xlu0 %v2913_v36, %s3253_s11  ;;  %v3450_v46 = vld [vmem:[#allocation2 + $0x71] sm:$0xff]  ;;  %v2938_v48 = vpack.i.bf16 %v3446_v44, %v3448_v45  ;;  %v3464_v53 = vld [vmem:[#allocation2 + $0xc0] sm:$0xff] }
  0x24   :  { %2924 = vrot.lane.b32.xlu1 %v2923_v37, %s3253_s11  ;;  %v2943_v49 = vpack.i.bf16 %v3450_v46, %v3452_v47  ;;  %v3460_v51 = vld [vmem:[#allocation2 + $0xb0] sm:$0xff]  ;;  %v3474_v57 = vld [vmem:[#allocation2 + $0xc1] sm:$0xff] }
  0x25   :  { %v3462_v52 = vld [vmem:[#allocation2 + $0xb1] sm:$0xff]  ;;  %v2948_v55 = vpack.i.bf16 %v120_v50, %v3460_v51  ;;  %v3483_v61 = vld [vmem:[#allocation2 + $0xe0] sm:$0xff]  ;;  %v610_v37 = vld [vmem:[%s4790_s1 + $0x188] sm:$0xff] }
  0x26   :  { %v2953_v56 = vpack.i.bf16 %v3462_v52, %v3464_v53  ;;  %v3476_v58 = vld [vmem:[#allocation2 + $0xd0] sm:$0xff]  ;;  %v3509_v9 = vld [vmem:[#allocation2 + $0xe1] sm:$0xff]  ;;  %v572_v50 = vld [vmem:[%s4790_s1 + $0x58] sm:$0xff] }
  0x27   :  { %2929 = vrot.lane.b32.xlu0 %v2928_v42, %s3253_s11  ;;  %v3481_v60 = vld [vmem:[#allocation2 + $0xd1] sm:$0xff]  ;;  %v2958_v7 = vpack.i.bf16 %v3474_v57, %v3476_v58  ;;  %v3521_v14 = vld [vmem:[#allocation2 + $0x100] sm:$0xff] }
  0x28   :  { %2934 = vrot.lane.b32.xlu1 %v2933_v43, %s3253_s11  ;;  %v2963_v8 = vpack.i.bf16 %v3481_v60, %v3483_v61  ;;  %v3517_v12 = vld [vmem:[#allocation2 + $0xf0] sm:$0xff]  ;;  %v585_v16 = vld [vmem:[%s4790_s1 + $0xc0] sm:$0xff] }
  0x29   :  { %v3519_v13 = vld [vmem:[#allocation2 + $0xf1] sm:$0xff]  ;;  %v2968_v19 = vpack.i.bf16 %v3509_v9, %v3517_v12  ;;  %v3535_v21 = vld [vmem:[#allocation2 + $0x101] sm:$0xff]  ;;  %v2759_v26 = vpack.c.bf16 %v586_v17, %v585_v16 }
  0x2a   :  { %4802 = vst [vmem:[#allocation6_spill] sm:$0xff] %v3519_v13  ;;  %v2973_v20 = vpack.i.bf16 %v3519_v13, %v3521_v14  ;;  %4803 = vst [vmem:[#allocation7_spill] sm:$0xff] %v3535_v21  ;;  %v3543_v24 = vld [vmem:[#allocation2 + $0x110] sm:$0xff]  ;;  %v159_v25 = vld [vmem:[#allocation2 + $0x120] sm:$0xff] }
  0x2b   :  { %2939 = vrot.lane.b32.xlu0 %v2938_v48, %s3253_s11  ;;  %v587_v30 = vld [vmem:[%s4790_s1 + $0xd0] sm:$0xff]  ;;  %v609_v36 = vld [vmem:[%s4790_s1 + $0x180] sm:$0xff]  ;;  %v2761_v48 = vpack.c.bf16 %v570_v23, %v569_v22  ;;  %v2983_v59 = vpack.i.bf16 %v3411_v28, %v159_v25  ;;  %2760 = vmatprep.subr.bf16.mxu0 %v2759_v26  ;;  %v574_v17 = vld [vmem:[%s4790_s1 + $0x68] sm:$0xff] }
  0x2c   :  { %2944 = vrot.lane.b32.xlu1 %v2943_v49, %s3253_s11  ;;  %v3557_v42 = vld [vmem:[#allocation2 + $0x111] sm:$0xff]  ;;  %v2775_v54 = vpack.c.bf16 %v610_v37, %v609_v36  ;;  %v3575_v62 = vld [vmem:[#allocation2 + $0x22] sm:$0xff]  ;;  %v2763_v2 = vpack.c.bf16 %v588_v31, %v587_v30  ;;  %v2783_v36 = vpack.c.bf16 %v614_v11, %v613_v10 }
  0x2d   :  { %v3559_v43 = vld [vmem:[#allocation2 + $0x12] sm:$0xff]  ;;  %2762 = vmatpush3.bf16.msra.mxu0 %v2761_v48  ;;  %v573_v16 = vld [vmem:[%s4790_s1 + $0x60] sm:$0xff]  ;;  %v598_v23 = vld [vmem:[%s4790_s1 + $0x128] sm:$0xff] }
  0x2e   :  { %v571_v49 = vld [vmem:[%s4790_s1 + $0x50] sm:$0xff]  ;;  %2776 = vmatprep.subr.bf16.mxu1 %v2775_v54  ;;  %v597_v22 = vld [vmem:[%s4790_s1 + $0x120] sm:$0xff]  ;;  %2764 = vmatprep.subr.bf16.mxu0 %v2763_v2  ;;  %v592_v37 = vld [vmem:[%s4790_s1 + $0xf8] sm:$0xff] }
  0x2f   :  { %2949 = vrot.lane.b32.xlu0 %v2948_v55, %s3253_s11  ;;  %v593_v55 = vld [vmem:[%s4790_s1 + $0x100] sm:$0xff]  ;;  %v595_v5 = vld [vmem:[%s4790_s1 + $0x110] sm:$0xff]  ;;  %v2765_v15 = vpack.c.bf16 %v572_v50, %v571_v49  ;;  %v616_v49 = vld [vmem:[%s4790_s1 + $0x1b8] sm:$0xff]  ;;  %v2769_v50 = vpack.c.bf16 %v574_v17, %v573_v16 }
  0x30   :  { %2954 = vrot.lane.b32.xlu1 %v2953_v56, %s3253_s11  ;;  %v2978_v56 = vpack.i.bf16 %v3535_v21, %v3543_v24  ;;  %v2777_v3 = vpack.c.bf16 %v594_v0, %v593_v55  ;;  %v2781_v18 = vpack.c.bf16 %v596_v6, %v595_v5  ;;  %v3622_v25 = vld [vmem:[#allocation2 + $0x32] sm:$0xff]  ;;  %v3624_v26 = vld [vmem:[#allocation2 + $0x42] sm:$0xff] }
  0x31   :  { %v591_v31 = vld [vmem:[%s4790_s1 + $0xf0] sm:$0xff]  ;;  %2766 = vmatpush3.bf16.msra.mxu0 %v2765_v15  ;;  %v576_v55 = vld [vmem:[%s4790_s1 + $0x78] sm:$0xff]  ;;  %v625_v5 = vld [vmem:[%s4790_s1 + $0x200] sm:$0xff] }
  0x32   :  { %2778 = vmatpush3.bf16.msra.mxu1 %v2777_v3  ;;  %v615_v48 = vld [vmem:[%s4790_s1 + $0x1b0] sm:$0xff]  ;;  %v3658_v3 = vld [vmem:[#allocation2 + $0x62] sm:$0xff] }
  0x33   :  { %2959 = vrot.lane.b32.xlu0 %v2958_v7, %s3253_s11  ;;  %v590_v7 = vld [vmem:[%s4790_s1 + $0xe8] sm:$0xff]  ;;  %v575_v54 = vld [vmem:[%s4790_s1 + $0x70] sm:$0xff]  ;;  %v2787_v6 = vpack.c.bf16 %v616_v49, %v615_v48  ;;  %v601_v16 = vld [vmem:[%s4790_s1 + $0x140] sm:$0xff] }
  0x34   :  { %2964 = vrot.lane.b32.xlu1 %v2963_v8, %s3253_s11  ;;  %v2779_v8 = vpack.c.bf16 %v612_v4, %v611_v1  ;;  %v2767_v30 = vpack.c.bf16 %v590_v7, %v589_v63  ;;  %v3003_v63 = vpack.i.bf16 %v3624_v26, %v3436_v40  ;;  %v599_v0 = vld [vmem:[%s4790_s1 + $0x130] sm:$0xff]  ;;  %v600_v1 = vld [vmem:[%s4790_s1 + $0x138] sm:$0xff]  ;;  %v2771_v4 = vpack.c.bf16 %v592_v37, %v591_v31  ;;  %v626_v7 = vld [vmem:[%s4790_s1 + $0x208] sm:$0xff] }
  0x35   :  { %v3656_v2 = vld [vmem:[#allocation2 + $0x52] sm:$0xff]  ;;  %v618_v10 = vld [vmem:[%s4790_s1 + $0x1c8] sm:$0xff]  ;;  %v2773_v11 = vpack.c.bf16 %v576_v55, %v575_v54  ;;  %v2789_v15 = vpack.c.bf16 %v600_v1, %v599_v0 }
  0x36   :  { %2780 = vmatprep.subr.bf16.mxu1 %v2779_v8  ;;  %2768 = vmatprep.subr.bf16.mxu0 %v2767_v30  ;;  %v617_v8 = vld [vmem:[%s4790_s1 + $0x1c0] sm:$0xff]  ;;  %v3008_v17 = vpack.i.bf16 %v3656_v2, %v3446_v44 }
  0x37   :  { %2969 = vrot.lane.b32.xlu0 %v2968_v19, %s3253_s11  ;;  %v2988_v19 = vpack.i.bf16 %v3559_v43, %v3557_v42  ;;  %2782 = vmatpush3.bf16.msra.mxu1 %v2781_v18  ;;  %v3013_v18 = vpack.i.bf16 %v3658_v3, %v3450_v46 }
  0x38   :  { %2974 = vrot.lane.b32.xlu1 %v2973_v20, %s3253_s11  ;;  %v2993_v20 = vpack.i.bf16 %v3575_v62, %v3422_v34  ;;  %2784 = vmatprep.subr.bf16.mxu1 %v2783_v36 }
  0x39   :  { %2770 = vmatpush3.bf16.msra.mxu0 %v2769_v50 }
  0x3b   :  { %2979 = vrot.lane.b32.xlu0 %v2978_v56, %s3253_s11  ;;  %v2785_v56 = vpack.c.bf16 %v598_v23, %v597_v22 }
  0x3c   :  { %2984 = vrot.lane.b32.xlu1 %v2983_v59, %s3253_s11  ;;  %v2998_v59 = vpack.i.bf16 %v3622_v25, %v3432_v38 }
  0x3d   :  { %2786 = vmatpush3.bf16.msra.mxu1 %v2785_v56 }
  0x3f   :  { %2989 = vrot.lane.b32.xlu0 %v2988_v19, %s3253_s11  ;;  %v216_v19 = vld [vmem:[#allocation2 + $0x91] sm:$0xff] }
  0x40   :  { %2994 = vrot.lane.b32.xlu1 %v2993_v20, %s3253_s11  ;;  %v602_v20 = vld [vmem:[%s4790_s1 + $0x148] sm:$0xff] }
  0x43   :  { %2999 = vrot.lane.b32.xlu0 %v2998_v59, %s3253_s11 }
  0x44   :  { %3004 = vrot.lane.b32.xlu1 %v3003_v63, %s3253_s11 }
  0x45   :  { %10 = vsyncpa [#allocation4], 0  ;;  %v3684_v22 = vld [vmem:[#allocation2 + $0x72] sm:$0xff]  ;;  %v3686_v23 = vld [vmem:[#allocation2 + $0x81] sm:$0xff]  ;;  %2772 = vmatprep.subr.bf16.mxu0 %v2771_v4  ;;  %v3690_v31 = vpack.c.bf16 %v626_v7, %v625_v5  ;;  %2788 = vmatprep.subr.bf16.mxu1 %v2787_v6  ;;  %v2791_v36 = vpack.c.bf16 %v618_v10, %v617_v8  ;;  %v2793_v49 = vpack.c.bf16 %v602_v20, %v601_v16 }
  0x46   :  { %v3688_v30 = vld [vmem:[#allocation2 + $0x82] sm:$0xff]  ;;  %v619_v37 = vld [vmem:[%s4790_s1 + $0x1d0] sm:$0xff]  ;;  %v620_v48 = vld [vmem:[%s4790_s1 + $0x1d8] sm:$0xff]  ;;  %2774 = vmatpush3.bf16.msra.mxu0 %v2773_v11  ;;  %2790 = vmatpush3.bf16.msra.mxu1 %v2789_v15  ;;  %v3018_v50 = vpack.i.bf16 %v3684_v22, %v3686_v23 }
  0x47   :  { %3009 = vrot.lane.b32.xlu0 %v3008_v17, %s3253_s11  ;;  %v3023_v54 = vpack.i.bf16 %v3688_v30, %v216_v19  ;;  %v603_v55 = vld [vmem:[%s4790_s1 + $0x150] sm:$0xff]  ;;  %v604_v56 = vld [vmem:[%s4790_s1 + $0x158] sm:$0xff]  ;;  %v3711_v63 = vld [vmem:[#allocation2 + $0xc2] sm:$0xff]  ;;  %2808 = vmatprep.subr.bf16.mxu0 %v3690_v31  ;;  %v2795_v0 = vpack.c.bf16 %v620_v48, %v619_v37 }
  0x48   :  { %3014 = vrot.lane.b32.xlu1 %v3013_v18, %s3253_s11  ;;  %v3709_v59 = vld [vmem:[#allocation2 + $0xb2] sm:$0xff]  ;;  %2792 = vmatprep.subr.bf16.mxu1 %v2791_v36  ;;  %v621_v1 = vld [vmem:[%s4790_s1 + $0x1e0] sm:$0xff]  ;;  %v622_v4 = vld [vmem:[%s4790_s1 + $0x1e8] sm:$0xff]  ;;  %v2797_v5 = vpack.c.bf16 %v604_v56, %v603_v55  ;;  %v3033_v7 = vpack.i.bf16 %v3711_v63, %v3481_v60 }
  0x49   :  { %v3028_v6 = vpack.i.bf16 %v3709_v59, %v3474_v57  ;;  %v605_v8 = vld [vmem:[%s4790_s1 + $0x160] sm:$0xff]  ;;  %v606_v10 = vld [vmem:[%s4790_s1 + $0x168] sm:$0xff]  ;;  %v3732_v11 = vld [vmem:[#allocation2 + $0xd2] sm:$0xff]  ;;  %v2799_v16 = vpack.c.bf16 %v622_v4, %v621_v1 }
  0x4a   :  { %2794 = vmatpush3.bf16.msra.mxu1 %v2793_v49  ;;  %v3734_v15 = vld [vmem:[#allocation2 + $0xe2] sm:$0xff]  ;;  %v623_v17 = vld [vmem:[%s4790_s1 + $0x1f0] sm:$0xff]  ;;  %v624_v18 = vld [vmem:[%s4790_s1 + $0x1f8] sm:$0xff]  ;;  %v2801_v19 = vpack.c.bf16 %v606_v10, %v605_v8  ;;  %v3038_v20 = vpack.i.bf16 %v3732_v11, %v3509_v9 }
  0x4b   :  { %3019 = vrot.lane.b32.xlu0 %v3018_v50, %s3253_s11  ;;  %2796 = vmatprep.subr.bf16.mxu1 %v2795_v0  ;;  %v3043_v36 = vpack.i.bf16 %v3734_v15, %v3519_v13  ;;  %v607_v37 = vld [vmem:[%s4790_s1 + $0x170] sm:$0xff]  ;;  %v608_v48 = vld [vmem:[%s4790_s1 + $0x178] sm:$0xff]  ;;  %v3756_v50 = vld [vmem:[#allocation2 + $0x102] sm:$0xff] }
  0x4c   :  { %3024 = vrot.lane.b32.xlu1 %v3023_v54, %s3253_s11  ;;  %v3754_v49 = vld [vmem:[#allocation2 + $0xf2] sm:$0xff]  ;;  %v2803_v54 = vpack.c.bf16 %v624_v18, %v623_v17  ;;  %v2805_v55 = vpack.c.bf16 %v608_v48, %v607_v37  ;;  %v3053_v0 = vpack.i.bf16 %v3756_v50, %v3557_v42  ;;  %v3766_v4 = vld [vmem:[#allocation2 + $0x121] sm:$0xff] }
  0x4d   :  { %v3048_v56 = vpack.i.bf16 %v3754_v49, %v3535_v21  ;;  %v3764_v1 = vld [vmem:[#allocation2 + $0x112] sm:$0xff]  ;;  %4804 = vst [vmem:[#allocation8_spill] sm:$0xff] %v3766_v4  ;;  %v128_v42 = vld [vmem:[#allocation2 + $0x2] sm:$0xff] }
  0x4e   :  { %2798 = vmatpush3.bf16.msra.mxu1 %v2797_v5  ;;  %v3768_v5 = vld [vmem:[#allocation2 + $0x122] sm:$0xff]  ;;  %v627_v18 = vld [vmem:[%s4790_s1 + $0x210] sm:$0xff] }
  0x4f   :  { %3029 = vrot.lane.b32.xlu0 %v3028_v6, %s3253_s11  ;;  %2800 = vmatprep.subr.bf16.mxu1 %v2799_v16  ;;  %4805 = vst [vmem:[#allocation9_spill] sm:$0xff] %v3768_v5  ;;  %v224_v6 = vld [vmem:[#allocation2 + $0x131] sm:$0xff]  ;;  %v96_v17 = vld [vmem:[#allocation2] sm:$0xff] }
  0x50   :  { %3034 = vrot.lane.b32.xlu1 %v3033_v7, %s3253_s11  ;;  %v3058_v7 = vpack.i.bf16 %v3764_v1, %v3766_v4  ;;  %v3063_v8 = vpack.i.bf16 %v3768_v5, %v224_v6 }
  0x52   :  { %2802 = vmatpush3.bf16.msra.mxu1 %v2801_v19  ;;  %v628_v19 = vld [vmem:[%s4790_s1 + $0x218] sm:$0xff] }
  0x53   :  { %3039 = vrot.lane.b32.xlu0 %v3038_v20, %s3253_s11  ;;  %2804 = vmatprep.subr.bf16.mxu1 %v2803_v54 }
  0x54   :  { %3044 = vrot.lane.b32.xlu1 %v3043_v36, %s3253_s11 }
  0x56   :  { %2806 = vmatpush3.bf16.msra.mxu1 %v2805_v55  ;;  %v2811_v55 = vpack.c.bf16 %v628_v19, %v627_v18 }
  0x57   :  { %3049 = vrot.lane.b32.xlu0 %v3048_v56, %s3253_s11  ;;  %v629_v56 = vld [vmem:[%s4790_s1 + $0x220] sm:$0xff] }
  0x58   :  { %3054 = vrot.lane.b32.xlu1 %v3053_v0, %s3253_s11  ;;  %v630_v0 = vld [vmem:[%s4790_s1 + $0x228] sm:$0xff] }
  0x5b   :  { %3059 = vrot.lane.b32.xlu0 %v3058_v7, %s3253_s11 }
  0x5c   :  { %3064 = vrot.lane.b32.xlu1 %v3063_v8, %s3253_s11 }
  0x91   :  { %v2910_v10 = vpop.permute.xlu0 %2909 }
  0x92   :  { %v2920_v16 = vpop.permute.xlu1 %2919  ;;  %v2912_v20 = vunpack.i.h.bf16 %v2910_v10  ;;  %v2911_v36 = vunpack.i.l.bf16 %v2910_v10 }
  0x93   :  { %v2921_v37 = vunpack.i.l.bf16 %v2920_v16  ;;  %v2922_v10 = vunpack.i.h.bf16 %v2920_v16  ;;  %v631_v16 = vld [vmem:[%s4790_s1 + $0x230] sm:$0xff] }
  0x94   :  { %v513_v48 = vsel %vm21_vm0, %v128_v42, %v2911_v36  ;;  %v497_v54 = vsel %vm21_vm0, %v96_v17, %v2912_v20  ;;  %v2815_v42 = vpack.c.bf16 %v630_v0, %v629_v56 }
  0x95   :  { %v2915_v6 = vpop.permute.xlu0 %2914  ;;  %752 = vmatprep.mubr.f32.mxu0 %v513_v48  ;;  %v515_v20 = vsel %vm21_vm0, %v3575_v62, %v2921_v37 }
  0x96   :  { %v2925_v7 = vpop.permute.xlu1 %2924  ;;  %v2917_v8 = vunpack.i.h.bf16 %v2915_v6  ;;  %v2916_v5 = vunpack.i.l.bf16 %v2915_v6  ;;  %753 = vmatmul.mubr.f32.vlgmr.msra.gmra.mrb[0].mxu0 %v497_v54 }
  0x97   :  { %2810 = vmatpush3.bf16.msra.mxu0 %v3690_v31  ;;  %v2926_v17 = vunpack.i.l.bf16 %v2925_v7  ;;  %v632_v31 = vld [vmem:[%s4790_s1 + $0x238] sm:$0xff] }
  0x98   :  { %v514_v18 = vsel %vm21_vm0, %v3559_v43, %v2916_v5  ;;  %v498_v19 = vsel %vm21_vm0, %v3409_v27, %v2917_v8  ;;  %2812 = vmatprep.subr.bf16.mxu0 %v2811_v55  ;;  %v2927_v43 = vunpack.i.h.bf16 %v2925_v7  ;;  %v499_v27 = vsel %vm21_vm0, %v3420_v33, %v2922_v10 }
  0x99   :  { %v2930_v36 = vpop.permute.xlu0 %2929  ;;  %757 = vmatprep.mubr.f32.mxu0 %v514_v18  ;;  %v516_v37 = vsel %vm21_vm0, %v3622_v25, %v2926_v17  ;;  %v2819_v54 = vpack.c.bf16 %v632_v31, %v631_v16 }
  0x9a   :  { %v2935_v48 = vpop.permute.xlu1 %2934  ;;  %758 = vmatmul.mubr.f32.gmra.mrb[2].mxu0 %v498_v19  ;;  %v2931_v5 = vunpack.i.l.bf16 %v2930_v36  ;;  %v2932_v6 = vunpack.i.h.bf16 %v2930_v36  ;;  %v500_v8 = vsel %vm21_vm0, %v3413_v29, %v2927_v43 }
  0x9b   :  { %762 = vmatprep.mubr.f32.mxu0 %v515_v20  ;;  %2814 = vmatpush3.bf16.msra.mxu0 %v2811_v55  ;;  %v2936_v7 = vunpack.i.l.bf16 %v2935_v48  ;;  %v2937_v17 = vunpack.i.h.bf16 %v2935_v48 }
  0x9c   :  { %2816 = vmatprep.subr.bf16.mxu0 %v2815_v42  ;;  %v517_v10 = vsel %vm21_vm0, %v3624_v26, %v2931_v5  ;;  %v501_v19 = vsel %vm21_vm0, %v3424_v35, %v2932_v6 }
  0x9d   :  { %v2940_v56 = vpop.permute.xlu0 %2939  ;;  %v518_v36 = vsel %vm21_vm0, %v3656_v2, %v2936_v7  ;;  %v502_v43 = vsel %vm21_vm0, %v3434_v39, %v2937_v17  ;;  %v136_v17 = vld [vmem:[#allocation2 + $0xa2] sm:$0xff] }
  0x9e   :  { %v2945_v0 = vpop.permute.xlu1 %2944  ;;  %763 = vmatmul.mubr.f32.gmra.mrb[4].mxu0 %v499_v27  ;;  %v2941_v20 = vunpack.i.l.bf16 %v2940_v56  ;;  %v2942_v31 = vunpack.i.h.bf16 %v2940_v56 }
  0x9f   :  { %767 = vmatprep.mubr.f32.mxu0 %v516_v37  ;;  %2818 = vmatpush3.bf16.msra.mxu0 %v2815_v42  ;;  %v2946_v48 = vunpack.i.l.bf16 %v2945_v0 }
  0xa0   :  { %2820 = vmatprep.subr.bf16.mxu0 %v2819_v54  ;;  %v519_v27 = vsel %vm21_vm0, %v3658_v3, %v2941_v20  ;;  %v503_v6 = vsel %vm21_vm0, %v3438_v41, %v2942_v31 }
  0xa1   :  { %v2950_v55 = vpop.permute.xlu0 %2949  ;;  %v520_v56 = vsel %vm21_vm0, %v3684_v22, %v2946_v48  ;;  %v104_v48 = vld [vmem:[#allocation2 + $0xa0] sm:$0xff] }
  0xa2   :  { %v2955_v18 = vpop.permute.xlu1 %2954  ;;  %768 = vmatmul.mubr.f32.gmra.mrb[6].mxu0 %v500_v8  ;;  %v2951_v8 = vunpack.i.l.bf16 %v2950_v55  ;;  %v2952_v20 = vunpack.i.h.bf16 %v2950_v55 }
  0xa3   :  { %772 = vmatprep.mubr.f32.mxu0 %v517_v10  ;;  %2822 = vmatpush3.bf16.msra.mxu0 %v2819_v54  ;;  %v2947_v54 = vunpack.i.h.bf16 %v2945_v0 }
  0xa5   :  { %v3816_v16 = vpop.permute.xlu0 %2959  ;;  %v504_v0 = vsel %vm21_vm0, %v3448_v45, %v2947_v54  ;;  %v505_v54 = vsel %vm21_vm0, %v104_v48, %v2952_v20 }
  0xa6   :  { %v3818_v42 = vpop.permute.xlu1 %2964  ;;  %773 = vmatmul.mubr.f32.gmra.mrb[8].mxu0 %v501_v19  ;;  %v2961_v13 = vunpack.i.l.bf16 %v3816_v16 }
  0xa7   :  { %777 = vmatprep.mubr.f32.mxu0 %v518_v36  ;;  %v2956_v36 = vunpack.i.l.bf16 %v2955_v18 }
  0xa9   :  { %v3824_v5 = vpop.permute.xlu0 %2969 }
  0xaa   :  { %v3826_v37 = vpop.permute.xlu1 %2974  ;;  %778 = vmatmul.mubr.f32.gmra.mrb[10].mxu0 %v502_v43  ;;  %v521_v43 = vsel %vm21_vm0, %v136_v17, %v2951_v8  ;;  %v522_v17 = vsel %vm21_vm0, %v3709_v59, %v2956_v36  ;;  %v523_v36 = vsel %vm21_vm0, %v3711_v63, %v2961_v13  ;;  %v2971_v13 = vunpack.i.l.bf16 %v3824_v5 }
  0xab   :  { %782 = vmatprep.mubr.f32.mxu0 %v519_v27 }
  0xad   :  { %v3832_v7 = vpop.permute.xlu0 %2979 }
  0xae   :  { %v3834_v10 = vpop.permute.xlu1 %2984  ;;  %783 = vmatmul.mubr.f32.gmra.mrb[12].mxu0 %v503_v6 }
  0xaf   :  { %v2987_v19 = vunpack.i.h.bf16 %v3834_v10  ;;  %787 = vmatprep.mubr.f32.mxu0 %v520_v56  ;;  %v2957_v56 = vunpack.i.h.bf16 %v2955_v18 }
  0xb1   :  { %v545_v31 = vsel %vm21_vm0, %v3420_v33, %v2987_v19  ;;  %v3842_v27 = vpop.permute.xlu0 %2989 }
  0xb2   :  { %v2995_v4 = vpop.permute.xlu1 %2994  ;;  %897 = vmatprep.mubr.f32.mxu1 %v545_v31  ;;  %v2992_v6 = vunpack.i.h.bf16 %v3842_v27  ;;  %788 = vmatmul.mubr.f32.gmra.mrb[14].mxu0 %v504_v0  ;;  %v2962_v31 = vunpack.i.h.bf16 %v3816_v16 }
  0xb3   :  { %v2997_v21 = vunpack.i.h.bf16 %v2995_v4  ;;  %v2996_v55 = vunpack.i.l.bf16 %v2995_v4  ;;  %792 = vmatprep.mubr.f32.mxu0 %v521_v43  ;;  %v2966_v43 = vunpack.i.l.bf16 %v3818_v42 }
  0xb4   :  { %v529_v33 = vsel %vm21_vm0, %v3418_v32, %v2992_v6  ;;  %v506_v32 = vsel %vm21_vm0, %v3460_v51, %v2957_v56  ;;  %v507_v51 = vsel %vm21_vm0, %v3464_v53, %v2962_v31  ;;  %v2981_v31 = vunpack.i.l.bf16 %v3832_v7 }
  0xb5   :  { %v546_v8 = vsel %vm21_vm0, %v3413_v29, %v2996_v55  ;;  %898 = vmatmul.mubr.f32.vlgmr.msra.gmra.mrb[0].mxu1 %v529_v33  ;;  %v3000_v19 = vpop.permute.xlu0 %2999  ;;  %v530_v20 = vsel %vm21_vm0, %v3411_v28, %v2997_v21  ;;  %v2967_v21 = vunpack.i.h.bf16 %v3818_v42  ;;  %v524_v55 = vsel %vm21_vm0, %v3732_v11, %v2966_v43 }
  0xb6   :  { %v3005_v0 = vpop.permute.xlu1 %3004  ;;  %793 = vmatmul.mubr.f32.gmra.mrb[16].mxu0 %v505_v54  ;;  %v3002_v4 = vunpack.i.h.bf16 %v3000_v19  ;;  %v3001_v18 = vunpack.i.l.bf16 %v3000_v19  ;;  %902 = vmatprep.mubr.f32.mxu1 %v546_v8  ;;  %v2972_v42 = vunpack.i.h.bf16 %v3824_v5  ;;  %v525_v19 = vsel %vm21_vm0, %v3734_v15, %v2971_v13 }
  0xb7   :  { %797 = vmatprep.mubr.f32.mxu0 %v522_v17  ;;  %v3006_v29 = vunpack.i.l.bf16 %v3005_v0  ;;  %v3007_v6 = vunpack.i.h.bf16 %v3005_v0  ;;  %v508_v33 = vsel %vm21_vm0, %v3476_v58, %v2967_v21  ;;  %v2976_v17 = vunpack.i.l.bf16 %v3826_v37  ;;  %v200_v21 = vld [vmem:[#allocation2 + $0x90] sm:$0xff] }
  0xb8   :  { %v547_v59 = vsel %vm21_vm0, %v3424_v35, %v3001_v18  ;;  %v531_v28 = vsel %vm21_vm0, %v3422_v34, %v3002_v4  ;;  %v2977_v5 = vunpack.i.h.bf16 %v3826_v37  ;;  %v509_v18 = vsel %vm21_vm0, %v3483_v61, %v2972_v42 }
  0xb9   :  { %903 = vmatmul.mubr.f32.gmra.mrb[2].mxu1 %v530_v20  ;;  %v3010_v48 = vpop.permute.xlu0 %3009  ;;  %v548_v35 = vsel %vm21_vm0, %v3434_v39, %v3006_v29  ;;  %v532_v34 = vsel %vm21_vm0, %v3432_v38, %v3007_v6  ;;  %v2982_v37 = vunpack.i.h.bf16 %v3832_v7  ;;  %v527_v6 = vsel %vm21_vm0, %v3756_v50, %v2981_v31 }
  0xba   :  { %798 = vmatmul.mubr.f32.gmra.mrb[18].mxu0 %v506_v32  ;;  %907 = vmatprep.mubr.f32.mxu1 %v547_v59  ;;  %v3011_v16 = vunpack.i.l.bf16 %v3010_v48  ;;  %v3015_v56 = vpop.permute.xlu1 %3014  ;;  %v3012_v54 = vunpack.i.h.bf16 %v3010_v48  ;;  %v526_v32 = vsel %vm21_vm0, %v3754_v49, %v2976_v17  ;;  %v510_v59 = vsel %vm21_vm0, %v3517_v12, %v2977_v5 }
  0xbb   :  { %802 = vmatprep.mubr.f32.mxu0 %v523_v36  ;;  %v3016_v39 = vunpack.i.l.bf16 %v3015_v56  ;;  %v3017_v4 = vunpack.i.h.bf16 %v3015_v56  ;;  %v2986_v48 = vunpack.i.l.bf16 %v3834_v10 }
  0xbc   :  { %v549_v8 = vsel %vm21_vm0, %v3438_v41, %v3011_v16  ;;  %v533_v38 = vsel %vm21_vm0, %v3436_v40, %v3012_v54 }
  0xbd   :  { %908 = vmatmul.mubr.f32.gmra.mrb[4].mxu1 %v531_v28  ;;  %v3020_v0 = vpop.permute.xlu0 %3019  ;;  %v550_v20 = vsel %vm21_vm0, %v3448_v45, %v3016_v39  ;;  %v534_v40 = vsel %vm21_vm0, %v3446_v44, %v3017_v4 }
  0xbe   :  { %803 = vmatmul.mubr.f32.gmra.mrb[20].mxu0 %v507_v51  ;;  %912 = vmatprep.mubr.f32.mxu1 %v548_v35  ;;  %v3021_v41 = vunpack.i.l.bf16 %v3020_v0  ;;  %v3025_v29 = vpop.permute.xlu1 %3024  ;;  %v3022_v43 = vunpack.i.h.bf16 %v3020_v0  ;;  %v2991_v51 = vunpack.i.l.bf16 %v3842_v27  ;;  %v528_v35 = vsel %vm21_vm0, %v3764_v1, %v2986_v48 }
  0xbf   :  { %807 = vmatprep.mubr.f32.mxu0 %v524_v55  ;;  %v3026_v45 = vunpack.i.l.bf16 %v3025_v29  ;;  %v3027_v44 = vunpack.i.h.bf16 %v3025_v29  ;;  %v174_v29 = vld [vmem:[#allocation2 + $0x111] sm:$0xff] }
  0xc0   :  { %v551_v36 = vsel %vm21_vm0, %v3452_v47, %v3021_v41  ;;  %v535_v7 = vsel %vm21_vm0, %v3450_v46, %v3022_v43  ;;  %v511_v47 = vsel %vm21_vm0, %v3521_v14, %v2982_v37  ;;  %v512_v27 = vsel %vm21_vm0, %v3543_v24, %v2991_v51  ;;  %v207_v41 = vld [vmem:[#allocation2 + $0x120] sm:$0xff]  ;;  %v208_v43 = vld [vmem:[#allocation2 + $0x130] sm:$0xff] }
  0xc1   :  { %913 = vmatmul.mubr.f32.gmra.mrb[6].mxu1 %v532_v34  ;;  %v3030_v28 = vpop.permute.xlu0 %3029  ;;  %v552_v10 = vsel %vm21_vm0, %v200_v21, %v3026_v45  ;;  %v536_v46 = vsel %vm21_vm0, %v3686_v23, %v3027_v44 }
  0xc2   :  { %808 = vmatmul.mubr.f32.gmra.mrb[22].mxu0 %v508_v33  ;;  %917 = vmatprep.mubr.f32.mxu1 %v549_v8  ;;  %v3031_v16 = vunpack.i.l.bf16 %v3030_v28  ;;  %v3035_v13 = vpop.permute.xlu1 %3034  ;;  %v3032_v55 = vunpack.i.h.bf16 %v3030_v28  ;;  %v1619_v28 = vld [vmem:[%s4792_s3] sm:$0xff] }
  0xc3   :  { %812 = vmatprep.mubr.f32.mxu0 %v525_v19  ;;  %v3036_v56 = vunpack.i.l.bf16 %v3035_v13  ;;  %v3037_v42 = vunpack.i.h.bf16 %v3035_v13 }
  0xc4   :  { %v553_v54 = vsel %vm21_vm0, %v3464_v53, %v3031_v16  ;;  %v537_v33 = vsel %vm21_vm0, %v3462_v52, %v3032_v55  ;;  %v1637_v55 = vld [vmem:[%s4792_s3 + $0x90] sm:$0xff] }
  0xc5   :  { %918 = vmatmul.mubr.f32.gmra.mrb[8].mxu1 %v533_v38  ;;  %v3040_v34 = vpop.permute.xlu0 %3039  ;;  %v554_v39 = vsel %vm21_vm0, %v3476_v58, %v3036_v56  ;;  %v538_v17 = vsel %vm21_vm0, %v3474_v57, %v3037_v42  ;;  %v1639_v42 = vld [vmem:[%s4792_s3 + $0xa0] sm:$0xff] }
  0xc6   :  { %813 = vmatmul.mubr.f32.gmra.mrb[24].mxu0 %v509_v18  ;;  %922 = vmatprep.mubr.f32.mxu1 %v550_v20  ;;  %v3041_v23 = vunpack.i.l.bf16 %v3040_v34  ;;  %v3045_v8 = vpop.permute.xlu1 %3044  ;;  %v3042_v53 = vunpack.i.h.bf16 %v3040_v34  ;;  %v4807_v20 = vld [vmem:[#allocation7_spill] sm:$0xff]  ;;  %v1622_v34 = vld [vmem:[%s4792_s3 + $0x18] sm:$0xff] }
  0xc7   :  { %817 = vmatprep.mubr.f32.mxu0 %v526_v32  ;;  %v3046_v52 = vunpack.i.l.bf16 %v3045_v8  ;;  %v3047_v58 = vunpack.i.h.bf16 %v3045_v8 }
  0xc9   :  { %923 = vmatmul.mubr.f32.gmra.mrb[10].mxu1 %v534_v40  ;;  %v3050_v19 = vpop.permute.xlu0 %3049 }
  0xca   :  { %818 = vmatmul.mubr.f32.gmra.mrb[26].mxu0 %v510_v59  ;;  %927 = vmatprep.mubr.f32.mxu1 %v551_v36  ;;  %v3051_v57 = vunpack.i.l.bf16 %v3050_v19  ;;  %v3055_v0 = vpop.permute.xlu1 %3054  ;;  %v4809_v59 = vld [vmem:[#allocation9_spill] sm:$0xff] }
  0xcb   :  { %822 = vmatprep.mubr.f32.mxu0 %v527_v6  ;;  %v3056_v4 = vunpack.i.l.bf16 %v3055_v0  ;;  %v1636_v6 = vld [vmem:[%s4792_s3 + $0x88] sm:$0xff] }
  0xcd   :  { %928 = vmatmul.mubr.f32.gmra.mrb[12].mxu1 %v535_v7  ;;  %v3060_v38 = vpop.permute.xlu0 %3059  ;;  %v1620_v7 = vld [vmem:[%s4792_s3 + $0x8] sm:$0xff] }
  0xce   :  { %823 = vmatmul.mubr.f32.gmra.mrb[28].mxu0 %v511_v47  ;;  %932 = vmatprep.mubr.f32.mxu1 %v552_v10  ;;  %v3065_v18 = vpop.permute.xlu1 %3064  ;;  %v2825_v47 = vpack.c.bf16 %v1620_v7, %v1619_v28  ;;  %v1647_v28 = vld [vmem:[%s4792_s3 + $0xe0] sm:$0xff]  ;;  %v1656_v7 = vld [vmem:[%s4792_s3 + $0x128] sm:$0xff] }
  0xcf   :  { %827 = vmatprep.mubr.f32.mxu0 %v528_v35  ;;  %v3066_v32 = vunpack.i.l.bf16 %v3065_v18 }
  0xd1   :  { %933 = vmatmul.mubr.f32.gmra.mrb[14].mxu1 %v536_v46  ;;  %v560_v40 = vsel %vm21_vm0, %v208_v43, %v3066_v32  ;;  %v1638_v46 = vld [vmem:[%s4792_s3 + $0x98] sm:$0xff] }
  0xd2   :  { %828 = vmatmul.mubr.f32.gmra.mrb[30].mxu0 %v512_v27  ;;  %937 = vmatprep.mubr.f32.mxu1 %v553_v54  ;;  %v1621_v27 = vld [vmem:[%s4792_s3 + $0x10] sm:$0xff]  ;;  %v2827_v54 = vpack.c.bf16 %v1638_v46, %v1637_v55  ;;  %v1670_v32 = vld [vmem:[%s4792_s3 + $0x198] sm:$0xff] }
  0xd3   :  { %2679 = vmatprep.mubr.msk.f32.mxu0 %vm21_vm0, %v3575_v62  ;;  %v555_v62 = vsel %vm21_vm0, %v3483_v61, %v3041_v23  ;;  %v3052_v61 = vunpack.i.h.bf16 %v3050_v19 }
  0xd5   :  { %938 = vmatmul.mubr.f32.gmra.mrb[16].mxu1 %v537_v33  ;;  %v1640_v33 = vld [vmem:[%s4792_s3 + $0xa8] sm:$0xff] }
  0xd6   :  { %2680 = vmatmul.mubr.msk.f32.vlgmr.msra.gmra.mrb[32].mxu0 %vm21_vm0, %v3622_v25  ;;  %942 = vmatprep.mubr.f32.mxu1 %v554_v39  ;;  %v539_v25 = vsel %vm21_vm0, %v3481_v60, %v3042_v53  ;;  %v232_v60 = vld [vmem:[#allocation2 + $0x92] sm:$0xff]  ;;  %v2829_v39 = vpack.c.bf16 %v1622_v34, %v1621_v27  ;;  %v2831_v8 = vpack.c.bf16 %v1640_v33, %v1639_v42  ;;  %v1623_v53 = vld [vmem:[%s4792_s3 + $0x20] sm:$0xff]  ;;  %v1632_v42 = vld [vmem:[%s4792_s3 + $0x68] sm:$0xff] }
  0xd7   :  { %2682 = vmatprep.mubr.msk.f32.mxu0 %vm21_vm0, %v3624_v26  ;;  %v556_v26 = vsel %vm21_vm0, %v3517_v12, %v3046_v52  ;;  %v3057_v12 = vunpack.i.h.bf16 %v3055_v0  ;;  %v1641_v52 = vld [vmem:[%s4792_s3 + $0xb0] sm:$0xff]  ;;  %v1626_v0 = vld [vmem:[%s4792_s3 + $0x38] sm:$0xff]  ;;  %v1631_v34 = vld [vmem:[%s4792_s3 + $0x60] sm:$0xff] }
  0xd9   :  { %943 = vmatmul.mubr.f32.gmra.mrb[18].mxu1 %v538_v17  ;;  %v542_v31 = vsel %vm21_vm0, %v4807_v20, %v3057_v12  ;;  %v1624_v17 = vld [vmem:[%s4792_s3 + $0x28] sm:$0xff] }
  0xda   :  { %2683 = vmatmul.mubr.msk.f32.gmra.mrb[34].mxu0 %vm21_vm0, %v3656_v2  ;;  %947 = vmatprep.mubr.f32.mxu1 %v555_v62  ;;  %v540_v2 = vsel %vm21_vm0, %v3509_v9, %v3047_v58  ;;  %v3061_v9 = vunpack.i.l.bf16 %v3060_v38  ;;  %v1642_v62 = vld [vmem:[%s4792_s3 + $0xb8] sm:$0xff]  ;;  %v2833_v58 = vpack.c.bf16 %v1624_v17, %v1623_v53  ;;  %v1652_v20 = vld [vmem:[%s4792_s3 + $0x108] sm:$0xff]  ;;  %v1649_v53 = vld [vmem:[%s4792_s3 + $0xf0] sm:$0xff] }
  0xdb   :  { %2685 = vmatprep.mubr.msk.f32.mxu0 %vm21_vm0, %v3658_v3  ;;  %v557_v3 = vsel %vm21_vm0, %v3521_v14, %v3051_v57  ;;  %v3062_v14 = vunpack.i.h.bf16 %v3060_v38  ;;  %v2835_v57 = vpack.c.bf16 %v1642_v62, %v1641_v52  ;;  %v1668_v38 = vld [vmem:[%s4792_s3 + $0x188] sm:$0xff]  ;;  %v1650_v17 = vld [vmem:[%s4792_s3 + $0xf8] sm:$0xff] }
  0xdd   :  { %948 = vmatmul.mubr.f32.gmra.mrb[20].mxu1 %v539_v25 }
  0xde   :  { %2686 = vmatmul.mubr.msk.f32.gmra.mrb[36].mxu0 %vm21_vm0, %v3684_v22  ;;  %952 = vmatprep.mubr.f32.mxu1 %v556_v26  ;;  %v4806_v22 = vld [vmem:[#allocation6_spill] sm:$0xff]  ;;  %v1625_v26 = vld [vmem:[%s4792_s3 + $0x30] sm:$0xff] }
  0xdf   :  { %2688 = vmatprep.mubr.msk.f32.mxu0 %vm21_vm0, %v3688_v30  ;;  %v541_v5 = vsel %vm21_vm0, %v4806_v22, %v3052_v61  ;;  %v558_v30 = vsel %vm21_vm0, %v3543_v24, %v3056_v4  ;;  %v3067_v24 = vunpack.i.h.bf16 %v3065_v18  ;;  %v1627_v4 = vld [vmem:[%s4792_s3 + $0x40] sm:$0xff]  ;;  %v2837_v22 = vpack.c.bf16 %v1626_v0, %v1625_v26 }
  0xe0   :  { %v1651_v18 = vld [vmem:[%s4792_s3 + $0x100] sm:$0xff]  ;;  %v2851_v0 = vpack.c.bf16 %v1650_v17, %v1649_v53 }
  0xe1   :  { %953 = vmatmul.mubr.f32.gmra.mrb[22].mxu1 %v540_v2  ;;  %v1643_v2 = vld [vmem:[%s4792_s3 + $0xc0] sm:$0xff]  ;;  %v2857_v43 = vpack.c.bf16 %v1652_v20, %v1651_v18 }
  0xe2   :  { %2689 = vmatmul.mubr.msk.f32.gmra.mrb[38].mxu0 %vm21_vm0, %v232_v60  ;;  %957 = vmatprep.mubr.f32.mxu1 %v557_v3  ;;  %v1644_v60 = vld [vmem:[%s4792_s3 + $0xc8] sm:$0xff]  ;;  %v1667_v3 = vld [vmem:[%s4792_s3 + $0x180] sm:$0xff] }
  0xe3   :  { %2691 = vmatprep.mubr.msk.f32.mxu0 %vm21_vm0, %v3711_v63  ;;  %v559_v63 = vsel %vm21_vm0, %v207_v41, %v3061_v9  ;;  %v1645_v9 = vld [vmem:[%s4792_s3 + $0xd0] sm:$0xff] }
  0xe5   :  { %958 = vmatmul.mubr.f32.gmra.mrb[24].mxu1 %v541_v5  ;;  %v1628_v5 = vld [vmem:[%s4792_s3 + $0x48] sm:$0xff] }
  0xe6   :  { %2692 = vmatmul.mubr.msk.f32.gmra.mrb[40].mxu0 %vm21_vm0, %v3732_v11  ;;  %962 = vmatprep.mubr.f32.mxu1 %v558_v30  ;;  %v543_v11 = vsel %vm21_vm0, %v174_v29, %v3062_v14  ;;  %v2855_v30 = vpack.c.bf16 %v1668_v38, %v1667_v3  ;;  %v2839_v14 = vpack.c.bf16 %v1644_v60, %v1643_v2  ;;  %v1646_v29 = vld [vmem:[%s4792_s3 + $0xd8] sm:$0xff]  ;;  %v1633_v2 = vld [vmem:[%s4792_s3 + $0x70] sm:$0xff] }
  0xe7   :  { %2694 = vmatprep.mubr.msk.f32.mxu0 %vm21_vm0, %v3734_v15  ;;  %v4808_v15 = vld [vmem:[#allocation8_spill] sm:$0xff]  ;;  %v1634_v60 = vld [vmem:[%s4792_s3 + $0x78] sm:$0xff] }
  0xe8   :  { %v544_v37 = vsel %vm21_vm0, %v4808_v15, %v3067_v24  ;;  %2856 = vmatprep.subr.bf16.mxu0 %v2855_v30  ;;  %v1671_v15 = vld [vmem:[%s4792_s3 + $0x1a0] sm:$0xff] }
  0xe9   :  { %963 = vmatmul.mubr.f32.gmra.mrb[26].mxu1 %v542_v31  ;;  %v1669_v31 = vld [vmem:[%s4792_s3 + $0x190] sm:$0xff]  ;;  %2858 = vmatpush3.bf16.msra.mxu0 %v2857_v43 }
  0xea   :  { %2695 = vmatmul.mubr.msk.f32.gmra.mrb[42].mxu0 %vm21_vm0, %v3754_v49  ;;  %967 = vmatprep.mubr.f32.mxu1 %v559_v63  ;;  %v240_v49 = vld [vmem:[#allocation2 + $0x132] sm:$0xff]  ;;  %v2859_v24 = vpack.c.bf16 %v1670_v32, %v1669_v31 }
  0xeb   :  { %2697 = vmatprep.mubr.msk.f32.mxu0 %vm21_vm0, %v3756_v50 }
  0xec   :  { %2860 = vmatprep.subr.bf16.mxu0 %v2859_v24 }
  0xed   :  { %968 = vmatmul.mubr.f32.gmra.mrb[28].mxu1 %v543_v11  ;;  %v1653_v11 = vld [vmem:[%s4792_s3 + $0x110] sm:$0xff] }
  0xee   :  { %2698 = vmatmul.mubr.msk.f32.gmra.mrb[44].mxu0 %vm21_vm0, %v3764_v1  ;;  %972 = vmatprep.mubr.f32.mxu1 %v560_v40  ;;  %v1635_v1 = vld [vmem:[%s4792_s3 + $0x80] sm:$0xff]  ;;  %v1654_v40 = vld [vmem:[%s4792_s3 + $0x118] sm:$0xff] }
  0xef   :  { %2700 = vmatprep.mubr.msk.f32.mxu0 %vm21_vm0, %v4809_v59  ;;  %v2823_v44 = vpack.c.bf16 %v1636_v6, %v1635_v1  ;;  %v2843_v6 = vpack.c.bf16 %v1646_v29, %v1645_v9 }
  0xf1   :  { %973 = vmatmul.mubr.f32.gmra.mrb[30].mxu1 %v544_v37  ;;  %2824 = vmatprep.subr.bf16.mxu1 %v2823_v44  ;;  %v1672_v37 = vld [vmem:[%s4792_s3 + $0x1a8] sm:$0xff]  ;;  %v1655_v44 = vld [vmem:[%s4792_s3 + $0x120] sm:$0xff] }
  0xf2   :  { %2701 = vmatmul.mubr.msk.f32.gmra.mrb[46].mxu0 %vm21_vm0, %v240_v49  ;;  %2826 = vmatpush3.bf16.msra.mxu1 %v2825_v47  ;;  %v2841_v49 = vpack.c.bf16 %v1628_v5, %v1627_v4  ;;  %v2865_v27 = vpack.c.bf16 %v1656_v7, %v1655_v44 }
  0xf3   :  { %2828 = vmatprep.subr.bf16.mxu1 %v2827_v54 }
  0xf6   :  { %2830 = vmatpush3.bf16.msra.mxu1 %v2829_v39  ;;  %v4117_v39 = vld [vmem:[%s4791_s2] ss:$0 sm:$0xff] }
  0xf7   :  { %2832 = vmatprep.subr.bf16.mxu1 %v2831_v8 }
  0xfa   :  { %2834 = vmatpush3.bf16.msra.mxu1 %v2833_v58  ;;  %v2849_v58 = vpack.c.bf16 %v1632_v42, %v1631_v34 }
  0xfb   :  { %2836 = vmatprep.subr.bf16.mxu1 %v2835_v57 }
  0xfe   :  { %2838 = vmatpush3.bf16.msra.mxu1 %v2837_v22  ;;  %v2853_v22 = vpack.c.bf16 %v1634_v60, %v1633_v2 }
  0xff   :  { %2840 = vmatprep.subr.bf16.mxu1 %v2839_v14 }
 0x102   :  { %2842 = vmatpush3.bf16.msra.mxu1 %v2841_v49 }
 0x103   :  { %2844 = vmatprep.subr.bf16.mxu1 %v2843_v6 }
 0x169   :  { %v2327_v45 = vpop.f32.mrb[0].mxu0 }
 0x16a   :  { %v2328_v36 = vpop.f32.mrb[1].mxu0 }
 0x16b   :  { %v3974_v50 = vadd.f32 %v2328_v36, %v2327_v45  ;;  %v1629_v45 = vld [vmem:[%s4792_s3 + $0x50] sm:$0xff]  ;;  %v1630_v36 = vld [vmem:[%s4792_s3 + $0x58] sm:$0xff] }
 0x16c   :  { %v2845_v46 = vpack.c.bf16 %v1630_v36, %v1629_v45 }
 0x16d   :  { %v2330_v48 = vpop.f32.mrb[2].mxu0 }
 0x16e   :  { %v2331_v21 = vpop.f32.mrb[3].mxu0  ;;  %2846 = vmatpush3.bf16.msra.mxu1 %v2845_v46 }
 0x16f   :  { %v3988_v51 = vadd.f32 %v2331_v21, %v2330_v48  ;;  %v2861_v48 = vpack.c.bf16 %v1654_v40, %v1653_v11  ;;  %v2863_v21 = vpack.c.bf16 %v1672_v37, %v1671_v15 }
 0x171   :  { %v2333_v16 = vpop.f32.mrb[4].mxu0  ;;  %2862 = vmatpush3.bf16.msra.mxu0 %v2861_v48  ;;  %v760_v5 = vadd.f32 %v3988_v51, %v4117_v39 }
 0x172   :  { %v2334_v10 = vpop.f32.mrb[5].mxu0  ;;  %2864 = vmatprep.subr.bf16.mxu0 %v2863_v21 }
 0x173   :  { %v3990_v35 = vadd.f32 %v2334_v10, %v2333_v16  ;;  %v1648_v16 = vld [vmem:[%s4792_s3 + $0xe8] sm:$0xff]  ;;  %v1673_v10 = vld [vmem:[%s4792_s3 + $0x1b0] sm:$0xff] }
 0x174   :  { %v2847_v54 = vpack.c.bf16 %v1648_v16, %v1647_v28 }
 0x175   :  { %v2336_v13 = vpop.f32.mrb[6].mxu0  ;;  %2866 = vmatpush3.bf16.msra.mxu0 %v2865_v27  ;;  %v765_v32 = vadd.f32 %v3990_v35, %v4117_v39 }
 0x176   :  { %v2337_v56 = vpop.f32.mrb[7].mxu0  ;;  %2848 = vmatprep.subr.bf16.mxu1 %v2847_v54 }
 0x177   :  { %v4010_v23 = vadd.f32 %v2337_v56, %v2336_v13  ;;  %v1674_v13 = vld [vmem:[%s4792_s3 + $0x1b8] sm:$0xff]  ;;  %2850 = vmatpush3.bf16.msra.mxu1 %v2849_v58 }
 0x178   :  { %v2867_v33 = vpack.c.bf16 %v1674_v13, %v1673_v10  ;;  %2852 = vmatprep.subr.bf16.mxu1 %v2851_v0 }
 0x179   :  { %v2339_v19 = vpop.f32.mrb[8].mxu0  ;;  %v770_v37 = vadd.f32 %v4010_v23, %v4117_v39 }
 0x17a   :  { %v2340_v25 = vpop.f32.mrb[9].mxu0  ;;  %2868 = vmatprep.subr.bf16.mxu0 %v2867_v33 }
 0x17b   :  { %v4030_v61 = vadd.f32 %v2340_v25, %v2339_v19  ;;  %v755_v25 = vadd.f32 %v3974_v50, %v4117_v39  ;;  %2854 = vmatpush3.bf16.msra.mxu1 %v2853_v22 }
 0x17d   :  { %v2342_v12 = vpop.f32.mrb[10].mxu0  ;;  %v775_v6 = vadd.f32 %v4030_v61, %v4117_v39 }
 0x17e   :  { %v2343_v41 = vpop.f32.mrb[11].mxu0 }
 0x17f   :  { %v4065_v63 = vadd.f32 %v2343_v41, %v2342_v12 }
 0x181   :  { %v2345_v59 = vpop.f32.mrb[12].mxu0  ;;  %v780_v13 = vadd.f32 %v4065_v63, %v4117_v39 }
 0x182   :  { %v2346_v1 = vpop.f32.mrb[13].mxu0 }
 0x183   :  { %v4097_v47 = vadd.f32 %v2346_v1, %v2345_v59 }
 0x185   :  { %v2348_v55 = vpop.f32.mrb[14].mxu0  ;;  %v785_v42 = vadd.f32 %v4097_v47, %v4117_v39 }
 0x186   :  { %v2349_v56 = vpop.f32.mrb[15].mxu0 }
 0x187   :  { %v4119_v8 = vadd.f32 %v2349_v56, %v2348_v55 }
 0x188   :  { %v2407_v52 = vpop.f32.mrb[0].mxu1 }
 0x189   :  { %v2351_v62 = vpop.f32.mrb[16].mxu0  ;;  %v2408_v19 = vpop.f32.mrb[1].mxu1  ;;  %v790_v58 = vadd.f32 %v4119_v8, %v4117_v39 }
 0x18a   :  { %v2409_v57 = vadd.f32 %v2408_v19, %v2407_v52  ;;  %v2352_v26 = vpop.f32.mrb[17].mxu0 }
 0x18b   :  { %v4135_v4 = vadd.f32 %v2352_v26, %v2351_v62 }
 0x18c   :  { %v2410_v3 = vpop.f32.mrb[2].mxu1  ;;  %v4137_v38 = vadd.f32 %v2409_v57, %v755_v25 }
 0x18d   :  { %v2354_v12 = vpop.f32.mrb[18].mxu0  ;;  %v2411_v50 = vpop.f32.mrb[3].mxu1  ;;  %v795_v8 = vadd.f32 %v4135_v4, %v4117_v39  ;;  %v1683_v4 = vld [vmem:[%s4792_s3 + $0x200] sm:$0xff] }
 0x18e   :  { %v2412_v9 = vadd.f32 %v2411_v50, %v2410_v3  ;;  %v2355_v30 = vpop.f32.mrb[19].mxu0  ;;  %v1657_v3 = vld [vmem:[%s4792_s3 + $0x130] sm:$0xff] }
 0x18f   :  { %v4141_v18 = vadd.f32 %v2355_v30, %v2354_v12  ;;  %v1658_v12 = vld [vmem:[%s4792_s3 + $0x138] sm:$0xff] }
 0x190   :  { %v2413_v41 = vpop.f32.mrb[4].mxu1  ;;  %v905_v14 = vadd.f32 %v2412_v9, %v760_v5  ;;  %v2869_v9 = vpack.c.bf16 %v1658_v12, %v1657_v3 }
 0x191   :  { %v2357_v20 = vpop.f32.mrb[20].mxu0  ;;  %v2414_v31 = vpop.f32.mrb[5].mxu1 }
 0x192   :  { %v2415_v29 = vadd.f32 %v2414_v31, %v2413_v41  ;;  %v2358_v43 = vpop.f32.mrb[21].mxu0  ;;  %2870 = vmatpush3.bf16.msra.mxu0 %v2869_v9 }
 0x193   :  { %v4145_v24 = vadd.f32 %v2358_v43, %v2357_v20 }
 0x194   :  { %v2416_v11 = vpop.f32.mrb[6].mxu1  ;;  %v4147_v40 = vadd.f32 %v2415_v29, %v765_v32  ;;  %v1675_v32 = vld [vmem:[%s4792_s3 + $0x1c0] sm:$0xff]  ;;  %v1676_v29 = vld [vmem:[%s4792_s3 + $0x1c8] sm:$0xff] }
 0x195   :  { %v2360_v51 = vpop.f32.mrb[22].mxu0  ;;  %v2417_v15 = vpop.f32.mrb[7].mxu1 }
 0x196   :  { %v2418_v59 = vadd.f32 %v2417_v15, %v2416_v11  ;;  %v2361_v49 = vpop.f32.mrb[23].mxu0  ;;  %v2871_v11 = vpack.c.bf16 %v1676_v29, %v1675_v32  ;;  %v800_v15 = vadd.f32 %v4141_v18, %v4117_v39 }
 0x197   :  { %v4151_v45 = vadd.f32 %v2361_v49, %v2360_v51  ;;  %v1684_v51 = vld [vmem:[%s4792_s3 + $0x208] sm:$0xff] }
 0x198   :  { %v2419_v36 = vpop.f32.mrb[8].mxu1  ;;  %v915_v48 = vadd.f32 %v2418_v59, %v770_v37  ;;  %2872 = vmatprep.subr.bf16.mxu0 %v2871_v11 }
 0x199   :  { %v2363_v1 = vpop.f32.mrb[24].mxu0  ;;  %v2420_v35 = vpop.f32.mrb[9].mxu1  ;;  %v810_v3 = vadd.f32 %v4151_v45, %v4117_v39  ;;  %v1663_v45 = vld [vmem:[%s4792_s3 + $0x160] sm:$0xff] }
 0x19a   :  { %v2421_v28 = vadd.f32 %v2420_v35, %v2419_v36  ;;  %v2364_v21 = vpop.f32.mrb[25].mxu0  ;;  %v4203_v36 = vpack.c.bf16 %v1684_v51, %v1683_v4  ;;  %v1660_v35 = vld [vmem:[%s4792_s3 + $0x148] sm:$0xff] }
 0x19b   :  { %v4155_v44 = vadd.f32 %v2364_v21, %v2363_v1  ;;  %v1659_v1 = vld [vmem:[%s4792_s3 + $0x140] sm:$0xff] }
 0x19c   :  { %v2422_v7 = vpop.f32.mrb[10].mxu1  ;;  %v4157_v16 = vadd.f32 %v2421_v28, %v775_v6  ;;  %v2873_v18 = vpack.c.bf16 %v1660_v35, %v1659_v1  ;;  %2888 = vmatprep.subr.bf16.mxu1 %v4203_v36 }
 0x19d   :  { %v2366_v10 = vpop.f32.mrb[26].mxu0  ;;  %v2423_v23 = vpop.f32.mrb[11].mxu1 }
 0x19e   :  { %v2424_v55 = vadd.f32 %v2423_v23, %v2422_v7  ;;  %v2367_v46 = vpop.f32.mrb[27].mxu0  ;;  %v1677_v7 = vld [vmem:[%s4792_s3 + $0x1d0] sm:$0xff]  ;;  %2874 = vmatpush3.bf16.msra.mxu0 %v2873_v18 }
 0x19f   :  { %v4161_v27 = vadd.f32 %v2367_v46, %v2366_v10  ;;  %v1678_v10 = vld [vmem:[%s4792_s3 + $0x1d8] sm:$0xff]  ;;  %v1661_v46 = vld [vmem:[%s4792_s3 + $0x150] sm:$0xff] }
 0x1a0   :  { %v2425_v56 = vpop.f32.mrb[12].mxu1  ;;  %v4163_v54 = vadd.f32 %v2424_v55, %v780_v13 }
 0x1a1   :  { %v2369_v61 = vpop.f32.mrb[28].mxu0  ;;  %v2426_v34 = vpop.f32.mrb[13].mxu1 }
 0x1a2   :  { %v2427_v33 = vadd.f32 %v2426_v34, %v2425_v56  ;;  %v2370_v53 = vpop.f32.mrb[29].mxu0  ;;  %v1662_v56 = vld [vmem:[%s4792_s3 + $0x158] sm:$0xff] }
 0x1a3   :  { %v4167_v17 = vadd.f32 %v2370_v53, %v2369_v61  ;;  %v805_v61 = vadd.f32 %v4145_v24, %v4117_v39  ;;  %v2877_v53 = vpack.c.bf16 %v1662_v56, %v1661_v46  ;;  %v1679_v24 = vld [vmem:[%s4792_s3 + $0x1e0] sm:$0xff] }
 0x1a4   :  { %v2428_v52 = vpop.f32.mrb[14].mxu1  ;;  %v4169_v62 = vadd.f32 %v2427_v33, %v785_v42 }
 0x1a5   :  { %v2372_v63 = vpop.f32.mrb[30].mxu0  ;;  %v2429_v19 = vpop.f32.mrb[15].mxu1 }
 0x1a6   :  { %v2430_v25 = vadd.f32 %v2429_v19, %v2428_v52  ;;  %v2373_v57 = vpop.f32.mrb[31].mxu0 }
 0x1a7   :  { %v4173_v26 = vadd.f32 %v2373_v57, %v2372_v63 }
 0x1a8   :  { %v2431_v0 = vpop.f32.mrb[16].mxu1  ;;  %v4175_v2 = vadd.f32 %v2430_v25, %v790_v58  ;;  %v1171_v58 = vld [vmem:[#allocation2 + $0x1] sm:$0xff] }
 0x1a9   :  { %v2432_v47 = vpop.f32.mrb[17].mxu1  ;;  %v2681_v60 = vpop.f32.mrb[32].mxu0 }
 0x1aa   :  { %v2433_v50 = vadd.f32 %v2432_v47, %v2431_v0  ;;  %v1050_v22 = vadd.f32 %v2681_v60, %v905_v14  ;;  %v1044_v5 = vpop.f32.mrb[33].mxu0 }
 0x1ab   :  { %v1045_v30 = vadd.f32 %v1044_v5, %v4137_v38 }
 0x1ac   :  { %v1124_v41 = vmax.f32 %v1050_v22, 0.0  ;;  %v2434_v20 = vpop.f32.mrb[18].mxu1  ;;  %v4186_v31 = vadd.f32 %v2433_v50, %v795_v8 }
 0x1ad   :  { %v1123_v14 = vmax.f32 %v1045_v30, 0.0  ;;  %v2435_v43 = vpop.f32.mrb[19].mxu1  ;;  %v2684_v38 = vpop.f32.mrb[34].mxu0 }
 0x1ae   :  { %1140 = vst.msk [vmem:[#allocation2 + $0x21] sm:$0xff] %vm21_vm0, %v1124_v41  ;;  %v2436_v37 = vadd.f32 %v2435_v43, %v2434_v20  ;;  %v1060_v59 = vadd.f32 %v2684_v38, %v915_v48  ;;  %v1054_v49 = vpop.f32.mrb[35].mxu0 }
 0x1af   :  { %1139 = vst.msk [vmem:[#allocation2 + $0x11] sm:$0xff] %vm21_vm0, %v1123_v14  ;;  %v1055_v6 = vadd.f32 %v1054_v49, %v4147_v40  ;;  %v2875_v40 = vpack.c.bf16 %v1678_v10, %v1677_v7  ;;  %v1682_v14 = vld [vmem:[%s4792_s3 + $0x1f8] sm:$0xff] }
 0x1b0   :  { %v1126_v28 = vmax.f32 %v1060_v59, 0.0  ;;  %v2437_v21 = vpop.f32.mrb[20].mxu1  ;;  %v945_v48 = vadd.f32 %v2436_v37, %v800_v15  ;;  %v815_v37 = vadd.f32 %v4155_v44, %v4117_v39  ;;  %v1666_v7 = vld [vmem:[%s4792_s3 + $0x178] sm:$0xff] }
 0x1b1   :  { %v1125_v23 = vmax.f32 %v1055_v6, 0.0  ;;  %v2438_v13 = vpop.f32.mrb[21].mxu1  ;;  %v2687_v55 = vpop.f32.mrb[36].mxu0  ;;  %2876 = vmatprep.subr.bf16.mxu0 %v2875_v40 }
 0x1b2   :  { %1142 = vst.msk [vmem:[#allocation2 + $0x41] sm:$0xff] %vm21_vm0, %v1126_v28  ;;  %v2439_v34 = vadd.f32 %v2438_v13, %v2437_v21  ;;  %v1070_v42 = vadd.f32 %v2687_v55, %v4163_v54  ;;  %v1064_v33 = vpop.f32.mrb[37].mxu0  ;;  %v1680_v54 = vld [vmem:[%s4792_s3 + $0x1e8] sm:$0xff]  ;;  %2878 = vmatpush3.bf16.msra.mxu0 %v2877_v53 }
 0x1b3   :  { %1141 = vst.msk [vmem:[#allocation2 + $0x31] sm:$0xff] %vm21_vm0, %v1125_v23  ;;  %v1065_v52 = vadd.f32 %v1064_v33, %v4157_v16  ;;  %v2879_v16 = vpack.c.bf16 %v1680_v54, %v1679_v24 }
 0x1b4   :  { %v1128_v63 = vmax.f32 %v1070_v42, 0.0  ;;  %v2440_v19 = vpop.f32.mrb[22].mxu1  ;;  %v4232_v25 = vadd.f32 %v2439_v34, %v805_v61  ;;  %v820_v61 = vadd.f32 %v4161_v27, %v4117_v39 }
 0x1b5   :  { %v1127_v57 = vmax.f32 %v1065_v52, 0.0  ;;  %v2441_v0 = vpop.f32.mrb[23].mxu1  ;;  %v2690_v47 = vpop.f32.mrb[38].mxu0  ;;  %v4240_v60 = vld [vmem:[#allocation2 + $0x20] sm:$0xff]  ;;  %2880 = vmatprep.subr.bf16.mxu0 %v2879_v16 }
 0x1b6   :  { %1144 = vst.msk [vmem:[#allocation2 + $0x61] sm:$0xff] %vm21_vm0, %v1128_v63  ;;  %v2442_v12 = vadd.f32 %v2441_v0, %v2440_v19  ;;  %v1080_v8 = vadd.f32 %v2690_v47, %v4175_v2  ;;  %v1074_v50 = vpop.f32.mrb[39].mxu0  ;;  %v4246_v22 = vld [vmem:[#allocation2 + $0x10] sm:$0xff]  ;;  %v1664_v2 = vld [vmem:[%s4792_s3 + $0x168] sm:$0xff] }
 0x1b7   :  { %v4248_v5 = vld [vmem:[#allocation2 + $0x11] sm:$0xff]  ;;  %1143 = vst.msk [vmem:[#allocation2 + $0x51] sm:$0xff] %vm21_vm0, %v1127_v57  ;;  %v1075_v9 = vadd.f32 %v1074_v50, %v4169_v62  ;;  %v3068_v30 = vpack.i.bf16 %v1171_v58, %v4246_v22  ;;  %v2881_v4 = vpack.c.bf16 %v1664_v2, %v1663_v45  ;;  %v4274_v35 = vld [vmem:[#allocation2 + $0x21] sm:$0xff] }
 0x1b8   :  { %v3073_v41 = vpack.i.bf16 %v4248_v5, %v4240_v60  ;;  %v1130_v20 = vmax.f32 %v1080_v8, 0.0  ;;  %v2443_v32 = vpop.f32.mrb[24].mxu1  ;;  %v955_v29 = vadd.f32 %v2442_v12, %v810_v3  ;;  %v1681_v62 = vld [vmem:[%s4792_s3 + $0x1f0] sm:$0xff] }
 0x1b9   :  { %v1129_v43 = vmax.f32 %v1075_v9, 0.0  ;;  %v2444_v38 = vpop.f32.mrb[25].mxu1  ;;  %v2693_v11 = vpop.f32.mrb[40].mxu0  ;;  %3069 = vrot.lane.b32.xlu0 %v3068_v30, %s3253_s11  ;;  %v4269_v51 = vld [vmem:[#allocation2 + $0x40] sm:$0xff]  ;;  %v2883_v15 = vpack.c.bf16 %v1682_v14, %v1681_v62  ;;  %2882 = vmatpush3.bf16.msra.mxu0 %v2881_v4 }
 0x1ba   :  { %3074 = vrot.lane.b32.xlu1 %v3073_v41, %s3253_s11  ;;  %1146 = vst.msk [vmem:[#allocation2 + $0x81] sm:$0xff] %vm21_vm0, %v1130_v20  ;;  %v2445_v59 = vadd.f32 %v2444_v38, %v2443_v32  ;;  %v1090_v49 = vadd.f32 %v2693_v11, %v945_v48  ;;  %v1084_v1 = vpop.f32.mrb[41].mxu0  ;;  %v4276_v6 = vld [vmem:[#allocation2 + $0x30] sm:$0xff]  ;;  %v4299_v53 = vld [vmem:[#allocation2 + $0x41] sm:$0xff] }
 0x1bb   :  { %v4278_v18 = vld [vmem:[#allocation2 + $0x31] sm:$0xff]  ;;  %1145 = vst.msk [vmem:[#allocation2 + $0x71] sm:$0xff] %vm21_vm0, %v1129_v43  ;;  %v1085_v28 = vadd.f32 %v1084_v1, %v4186_v31  ;;  %v3078_v21 = vpack.i.bf16 %v4274_v35, %v4276_v6  ;;  %2884 = vmatprep.subr.bf16.mxu0 %v2883_v15  ;;  %v830_v43 = vadd.f32 %v4173_v26, %v4117_v39 }
 0x1bc   :  { %v3083_v44 = vpack.i.bf16 %v4278_v18, %v4269_v51  ;;  %v1665_v48 = vld [vmem:[%s4792_s3 + $0x170] sm:$0xff]  ;;  %v1132_v10 = vmax.f32 %v1090_v49, 0.0  ;;  %v2446_v23 = vpop.f32.mrb[26].mxu1  ;;  %v960_v13 = vadd.f32 %v2445_v59, %v815_v37 }
 0x1bd   :  { %v2885_v55 = vpack.c.bf16 %v1666_v7, %v1665_v48  ;;  %v1131_v31 = vmax.f32 %v1085_v28, 0.0  ;;  %v2447_v40 = vpop.f32.mrb[27].mxu1  ;;  %v2696_v46 = vpop.f32.mrb[42].mxu0  ;;  %3079 = vrot.lane.b32.xlu0 %v3078_v21, %s3253_s11  ;;  %v4294_v56 = vld [vmem:[#allocation2 + $0x60] sm:$0xff]  ;;  %v4334_v15 = vld [vmem:[#allocation2 + $0x12] sm:$0xff] }
 0x1be   :  { %3084 = vrot.lane.b32.xlu1 %v3083_v44, %s3253_s11  ;;  %1148 = vst.msk [vmem:[#allocation2 + $0xc1] sm:$0xff] %vm21_vm0, %v1132_v10  ;;  %v2448_v34 = vadd.f32 %v2447_v40, %v2446_v23  ;;  %v1100_v42 = vadd.f32 %v2696_v46, %v955_v29  ;;  %v1094_v33 = vpop.f32.mrb[43].mxu0  ;;  %v4301_v52 = vld [vmem:[#allocation2 + $0x50] sm:$0xff]  ;;  %v4318_v9 = vld [vmem:[#allocation2 + $0x61] sm:$0xff] }
 0x1bf   :  { %v4303_v63 = vld [vmem:[#allocation2 + $0x51] sm:$0xff]  ;;  %2886 = vmatpush3.bf16.msra.mxu0 %v2885_v55  ;;  %1147 = vst.msk [vmem:[#allocation2 + $0xb1] sm:$0xff] %vm21_vm0, %v1131_v31  ;;  %v1095_v19 = vadd.f32 %v1094_v33, %v4232_v25  ;;  %v3088_v58 = vpack.i.bf16 %v4299_v53, %v4301_v52  ;;  %v825_v25 = vadd.f32 %v4167_v17, %v4117_v39  ;;  %v1179_v21 = vld [vmem:[#allocation2 + $0xa1] sm:$0xff] }
 0x1c0   :  { %v3093_v27 = vpack.i.bf16 %v4303_v63, %v4294_v56  ;;  %v1134_v24 = vmax.f32 %v1100_v42, 0.0  ;;  %v2449_v54 = vpop.f32.mrb[28].mxu1  ;;  %v965_v57 = vadd.f32 %v2448_v34, %v820_v61  ;;  %v4343_v39 = vld [vmem:[#allocation2 + $0x22] sm:$0xff]  ;;  %v4360_v31 = vld [vmem:[#allocation2 + $0x32] sm:$0xff] }
 0x1c1   :  { %v1133_v0 = vmax.f32 %v1095_v19, 0.0  ;;  %v2450_v47 = vpop.f32.mrb[29].mxu1  ;;  %v2699_v16 = vpop.f32.mrb[44].mxu0  ;;  %3089 = vrot.lane.b32.xlu0 %v3088_v58, %s3253_s11  ;;  %v4313_v3 = vld [vmem:[#allocation2 + $0x80] sm:$0xff]  ;;  %v3113_v7 = vpack.i.bf16 %v4343_v39, %v1179_v21 }
 0x1c2   :  { %3094 = vrot.lane.b32.xlu1 %v3093_v27, %s3253_s11  ;;  %1150 = vst.msk [vmem:[#allocation2 + $0xe1] sm:$0xff] %vm21_vm0, %v1134_v24  ;;  %v2451_v12 = vadd.f32 %v2450_v47, %v2449_v54  ;;  %v1110_v8 = vadd.f32 %v2699_v16, %v965_v57  ;;  %v1104_v50 = vpop.f32.mrb[45].mxu0  ;;  %v4320_v30 = vld [vmem:[#allocation2 + $0x70] sm:$0xff]  ;;  %v3103_v41 = vpack.i.bf16 %v4274_v35, %v4313_v3  ;;  %v4372_v42 = vld [vmem:[#allocation2 + $0x42] sm:$0xff] }
 0x1c3   :  { %1149 = vst.msk [vmem:[#allocation2 + $0xd1] sm:$0xff] %vm21_vm0, %v1133_v0  ;;  %v1105_v45 = vadd.f32 %v1104_v50, %v960_v13  ;;  %v3098_v2 = vpack.i.bf16 %v4318_v9, %v4320_v30  ;;  %v4327_v29 = vld [vmem:[#allocation2 + $0x71] sm:$0xff]  ;;  %v4396_v16 = vld [vmem:[#allocation2 + $0x62] sm:$0xff] }
 0x1c4   :  { %v1136_v20 = vmax.f32 %v1110_v8, 0.0  ;;  %v2452_v17 = vpop.f32.mrb[30].mxu1  ;;  %v970_v32 = vadd.f32 %v2451_v12, %v825_v25  ;;  %v3108_v49 = vpack.i.bf16 %v4334_v15, %v4327_v29  ;;  %v4384_v24 = vld [vmem:[#allocation2 + $0x52] sm:$0xff]  ;;  %v4398_v25 = vld [vmem:[#allocation2 + $0x81] sm:$0xff] }
 0x1c5   :  { %v1135_v4 = vmax.f32 %v1105_v45, 0.0  ;;  %v2453_v62 = vpop.f32.mrb[31].mxu1  ;;  %v2702_v14 = vpop.f32.mrb[46].mxu0  ;;  %3099 = vrot.lane.b32.xlu0 %v3098_v2, %s3253_s11  ;;  %v4345_v26 = vld [vmem:[#allocation2 + $0xc0] sm:$0xff]  ;;  %v1274_v45 = vld [vmem:[#allocation2 + $0x91] sm:$0xff] }
 0x1c6   :  { %3104 = vrot.lane.b32.xlu1 %v3103_v41, %s3253_s11  ;;  %1152 = vst.msk [vmem:[#allocation2 + $0x101] sm:$0xff] %vm21_vm0, %v1136_v20  ;;  %v2454_v38 = vadd.f32 %v2453_v62, %v2452_v17  ;;  %v1114_v11 = vpop.f32.mrb[47].mxu0  ;;  %v4336_v37 = vld [vmem:[#allocation2 + $0xb0] sm:$0xff]  ;;  %v3123_v10 = vpack.i.bf16 %v4299_v53, %v4345_v26  ;;  %v4366_v61 = vld [vmem:[#allocation2 + $0xc1] sm:$0xff] }
 0x1c7   :  { %1151 = vst.msk [vmem:[#allocation2 + $0xf1] sm:$0xff] %vm21_vm0, %v1135_v4  ;;  %v1115_v59 = vadd.f32 %v1114_v11, %v970_v32  ;;  %v3118_v1 = vpack.i.bf16 %v4278_v18, %v4336_v37  ;;  %v4353_v13 = vld [vmem:[#allocation2 + $0xb1] sm:$0xff]  ;;  %v3133_v33 = vpack.i.bf16 %v4372_v42, %v4366_v61  ;;  %v4421_v62 = vld [vmem:[#allocation2 + $0x82] sm:$0xff] }
 0x1c8   :  { %v975_v28 = vadd.f32 %v2454_v38, %v830_v43  ;;  %v3128_v40 = vpack.i.bf16 %v4360_v31, %v4353_v13  ;;  %v4410_v2 = vld [vmem:[#allocation2 + $0x72] sm:$0xff]  ;;  %4810 = vst [vmem:[#allocation6_spill] sm:$0xff] %v4421_v62 }
 0x1c9   :  { %v1137_v44 = vmax.f32 %v1115_v59, 0.0  ;;  %3109 = vrot.lane.b32.xlu0 %v3108_v49, %s3253_s11  ;;  %v4368_v34 = vld [vmem:[#allocation2 + $0xe0] sm:$0xff]  ;;  %v4431_v11 = vld [vmem:[#allocation2 + $0xb2] sm:$0xff] }
 0x1ca   :  { %3119 = vrot.lane.b32.xlu1 %v3118_v1, %s3253_s11  ;;  %v1120_v48 = vadd.f32 %v2702_v14, %v975_v28  ;;  %v4355_v55 = vld [vmem:[#allocation2 + $0xd0] sm:$0xff]  ;;  %v3143_v19 = vpack.i.bf16 %v4318_v9, %v4368_v34  ;;  %v4390_v0 = vld [vmem:[#allocation2 + $0xe1] sm:$0xff] }
 0x1cb   :  { %1153 = vst.msk [vmem:[#allocation2 + $0x111] sm:$0xff] %vm21_vm0, %v1137_v44  ;;  %v3138_v46 = vpack.i.bf16 %v4303_v63, %v4355_v55  ;;  %v4378_v58 = vld [vmem:[#allocation2 + $0xd1] sm:$0xff]  ;;  %v3153_v12 = vpack.i.bf16 %v4396_v16, %v4390_v0  ;;  %v4433_v59 = vld [vmem:[#allocation2 + $0xc2] sm:$0xff] }
 0x1cc   :  { %v1138_v23 = vmax.f32 %v1120_v48, 0.0  ;;  %v3148_v54 = vpack.i.bf16 %v4384_v24, %v4378_v58  ;;  %v3193_v1 = vpack.i.bf16 %v4433_v59, %v4378_v58  ;;  %v4439_v28 = vld [vmem:[#allocation2 + $0xd2] sm:$0xff]  ;;  %v4443_v21 = vld [vmem:[#allocation2 + $0xe2] sm:$0xff] }
 0x1cd   :  { %3114 = vrot.lane.b32.xlu0 %v3113_v7, %s3253_s11  ;;  %v4392_v47 = vld [vmem:[#allocation2 + $0x100] sm:$0xff]  ;;  %v3198_v44 = vpack.i.bf16 %v4439_v28, %v4390_v0 }
 0x1ce   :  { %3124 = vrot.lane.b32.xlu1 %v3123_v10, %s3253_s11  ;;  %1154 = vst.msk [vmem:[#allocation2 + $0x121] sm:$0xff] %vm21_vm0, %v1138_v23  ;;  %v4380_v27 = vld [vmem:[#allocation2 + $0xf0] sm:$0xff]  ;;  %v3163_v8 = vpack.i.bf16 %v4398_v25, %v4392_v47  ;;  %v4415_v32 = vld [vmem:[#allocation2 + $0x101] sm:$0xff] }
 0x1cf   :  { %v3158_v57 = vpack.i.bf16 %v4327_v29, %v4380_v27  ;;  %v4404_v50 = vld [vmem:[#allocation2 + $0xf1] sm:$0xff]  ;;  %v3173_v14 = vpack.i.bf16 %v4421_v62, %v4415_v32  ;;  %v4453_v10 = vld [vmem:[#allocation2 + $0x102] sm:$0xff] }
 0x1d0   :  { %v3168_v20 = vpack.i.bf16 %v4410_v2, %v4404_v50  ;;  %v3203_v48 = vpack.i.bf16 %v4443_v21, %v4404_v50  ;;  %v4449_v7 = vld [vmem:[#allocation2 + $0xf2] sm:$0xff] }
 0x1d1   :  { %3129 = vrot.lane.b32.xlu0 %v3128_v40, %s3253_s11  ;;  %v3208_v23 = vpack.i.bf16 %v4449_v7, %v4415_v32 }
 0x1d2   :  { %3139 = vrot.lane.b32.xlu1 %v3138_v46, %s3253_s11  ;;  %v4406_v41 = vld [vmem:[#allocation2 + $0x110] sm:$0xff] }
 0x1d3   :  { %v3178_v17 = vpack.i.bf16 %v1274_v45, %v4406_v41  ;;  %v4427_v38 = vld [vmem:[#allocation2 + $0x111] sm:$0xff] }
 0x1d4   :  { %v3188_v49 = vpack.i.bf16 %v4431_v11, %v4427_v38  ;;  %v3213_v40 = vpack.i.bf16 %v4453_v10, %v4427_v38 }
 0x1d5   :  { %3134 = vrot.lane.b32.xlu0 %v3133_v33, %s3253_s11  ;;  %v4417_v4 = vld [vmem:[#allocation2 + $0x120] sm:$0xff] }
 0x1d6   :  { %3144 = vrot.lane.b32.xlu1 %v3143_v19, %s3253_s11  ;;  %v3183_v43 = vpack.i.bf16 %v4366_v61, %v4417_v4  ;;  %v4459_v46 = vld [vmem:[#allocation2 + $0x121] sm:$0xff]  ;;  %v1282_v19 = vld [vmem:[#allocation2 + $0x131] sm:$0xff] }
 0x1d7   :  { %4811 = vst [vmem:[#allocation7_spill] sm:$0xff] %v4459_v46  ;;  %v4461_v33 = vld [vmem:[#allocation2 + $0x122] sm:$0xff] }
 0x1d8   :  { %4812 = vst [vmem:[#allocation8_spill] sm:$0xff] %v4461_v33 }
 0x1d9   :  { %3149 = vrot.lane.b32.xlu0 %v3148_v54, %s3253_s11  ;;  %v4465_v54 = vld [vmem:[#allocation2 + $0x112] sm:$0xff] }
 0x1da   :  { %3159 = vrot.lane.b32.xlu1 %v3158_v57, %s3253_s11  ;;  %v3218_v57 = vpack.i.bf16 %v4465_v54, %v4459_v46  ;;  %v1688_v46 = vld [vmem:[%s4792_s3 + $0x228] sm:$0xff] }
 0x1dd   :  { %3154 = vrot.lane.b32.xlu0 %v3153_v12, %s3253_s11  ;;  %v3223_v12 = vpack.i.bf16 %v4461_v33, %v1282_v19  ;;  %v1687_v33 = vld [vmem:[%s4792_s3 + $0x220] sm:$0xff] }
 0x1de   :  { %3164 = vrot.lane.b32.xlu1 %v3163_v8, %s3253_s11  ;;  %v1187_v8 = vld [vmem:[#allocation2 + $0x2] sm:$0xff] }
 0x1e1   :  { %3169 = vrot.lane.b32.xlu0 %v3168_v20, %s3253_s11 }
 0x1e2   :  { %3179 = vrot.lane.b32.xlu1 %v3178_v17, %s3253_s11  ;;  %v1155_v17 = vld [vmem:[#allocation2] sm:$0xff] }
 0x1e5   :  { %3174 = vrot.lane.b32.xlu0 %v3173_v14, %s3253_s11  ;;  %v1685_v14 = vld [vmem:[%s4792_s3 + $0x210] sm:$0xff] }
 0x1e6   :  { %3184 = vrot.lane.b32.xlu1 %v3183_v43, %s3253_s11  ;;  %v1686_v43 = vld [vmem:[%s4792_s3 + $0x218] sm:$0xff] }
 0x1e9   :  { %3189 = vrot.lane.b32.xlu0 %v3188_v49, %s3253_s11 }
 0x1ea   :  { %3194 = vrot.lane.b32.xlu1 %v3193_v1, %s3253_s11 }
 0x1ed   :  { %3199 = vrot.lane.b32.xlu0 %v3198_v44, %s3253_s11 }
 0x1ee   :  { %3204 = vrot.lane.b32.xlu1 %v3203_v48, %s3253_s11 }
 0x1f1   :  { %3209 = vrot.lane.b32.xlu0 %v3208_v23, %s3253_s11 }
 0x1f2   :  { %3214 = vrot.lane.b32.xlu1 %v3213_v40, %s3253_s11  ;;  %v2891_v40 = vpack.c.bf16 %v1686_v43, %v1685_v14 }
 0x1f5   :  { %3219 = vrot.lane.b32.xlu0 %v3218_v57, %s3253_s11 }
 0x1f6   :  { %3224 = vrot.lane.b32.xlu1 %v3223_v12, %s3253_s11 }
 0x22b   :  { %v3070_v45 = vpop.permute.xlu0 %3069 }
 0x22c   :  { %v3075_v20 = vpop.permute.xlu1 %3074  ;;  %v3072_v49 = vunpack.i.h.bf16 %v3070_v45  ;;  %v3071_v1 = vunpack.i.l.bf16 %v3070_v45  ;;  %v2895_v45 = vpack.c.bf16 %v1688_v46, %v1687_v33 }
 0x22d   :  { %v3076_v44 = vunpack.i.l.bf16 %v3075_v20  ;;  %v3077_v19 = vunpack.i.h.bf16 %v3075_v20 }
 0x22e   :  { %v1571_v48 = vsel %vm21_vm0, %v1187_v8, %v3071_v1  ;;  %v1555_v23 = vsel %vm21_vm0, %v1155_v17, %v3072_v49  ;;  %v1689_v49 = vld [vmem:[%s4792_s3 + $0x230] sm:$0xff]  ;;  %v1690_v1 = vld [vmem:[%s4792_s3 + $0x238] sm:$0xff] }
 0x22f   :  { %v3080_v57 = vpop.permute.xlu0 %3079  ;;  %1810 = vmatprep.mubr.f32.mxu1 %v1571_v48  ;;  %v1572_v8 = vsel %vm21_vm0, %v4334_v15, %v3076_v44  ;;  %v1556_v43 = vsel %vm21_vm0, %v4246_v22, %v3077_v19  ;;  %v2899_v46 = vpack.c.bf16 %v1690_v1, %v1689_v49 }
 0x230   :  { %v3085_v12 = vpop.permute.xlu1 %3084  ;;  %v3081_v62 = vunpack.i.l.bf16 %v3080_v57  ;;  %1811 = vmatmul.mubr.f32.vlgmr.msra.gmra.mrb[32].mxu1 %v1555_v23  ;;  %v3082_v20 = vunpack.i.h.bf16 %v3080_v57 }
 0x231   :  { %2890 = vmatpush3.bf16.msra.mxu1 %v4203_v36  ;;  %1815 = vmatprep.mubr.f32.mxu1 %v1572_v8  ;;  %v3086_v15 = vunpack.i.l.bf16 %v3085_v12  ;;  %v3087_v33 = vunpack.i.h.bf16 %v3085_v12 }
 0x232   :  { %2892 = vmatprep.subr.bf16.mxu1 %v2891_v40  ;;  %v1573_v36 = vsel %vm21_vm0, %v4343_v39, %v3081_v62  ;;  %v1557_v48 = vsel %vm21_vm0, %v4240_v60, %v3082_v20 }
 0x233   :  { %v3090_v17 = vpop.permute.xlu0 %3089  ;;  %v1574_v57 = vsel %vm21_vm0, %v4360_v31, %v3086_v15  ;;  %v1558_v20 = vsel %vm21_vm0, %v4276_v6, %v3087_v33 }
 0x234   :  { %v3095_v14 = vpop.permute.xlu1 %3094  ;;  %1816 = vmatmul.mubr.f32.gmra.mrb[34].mxu1 %v1556_v43  ;;  %v3091_v23 = vunpack.i.l.bf16 %v3090_v17 }
 0x235   :  { %1820 = vmatprep.mubr.f32.mxu1 %v1573_v36  ;;  %2894 = vmatpush3.bf16.msra.mxu1 %v2891_v40  ;;  %v3092_v40 = vunpack.i.h.bf16 %v3090_v17  ;;  %v3096_v43 = vunpack.i.l.bf16 %v3095_v14  ;;  %v3097_v15 = vunpack.i.h.bf16 %v3095_v14 }
 0x236   :  { %2896 = vmatprep.subr.bf16.mxu1 %v2895_v45 }
 0x237   :  { %v3100_v44 = vpop.permute.xlu0 %3099 }
 0x238   :  { %v4499_v22 = vpop.permute.xlu1 %3104  ;;  %1821 = vmatmul.mubr.f32.gmra.mrb[36].mxu1 %v1557_v48  ;;  %v1559_v48 = vsel %vm21_vm0, %v4269_v51, %v3092_v40 }
 0x239   :  { %v3107_v19 = vunpack.i.h.bf16 %v4499_v22  ;;  %1825 = vmatprep.mubr.f32.mxu1 %v1574_v57  ;;  %2898 = vmatpush3.bf16.msra.mxu1 %v2895_v45  ;;  %v1575_v45 = vsel %vm21_vm0, %v4372_v42, %v3091_v23  ;;  %v3102_v57 = vunpack.i.h.bf16 %v3100_v44 }
 0x23a   :  { %2900 = vmatprep.subr.bf16.mxu1 %v2899_v46 }
 0x23b   :  { %v1603_v62 = vsel %vm21_vm0, %v4240_v60, %v3107_v19  ;;  %v3110_v12 = vpop.permute.xlu0 %3109  ;;  %v3101_v19 = vunpack.i.l.bf16 %v3100_v44 }
 0x23c   :  { %v4508_v8 = vpop.permute.xlu1 %3119  ;;  %1955 = vmatprep.mubr.f32.mxu0 %v1603_v62  ;;  %v3112_v49 = vunpack.i.h.bf16 %v3110_v12  ;;  %1826 = vmatmul.mubr.f32.gmra.mrb[38].mxu1 %v1558_v20  ;;  %v1560_v20 = vsel %vm21_vm0, %v4301_v52, %v3097_v15 }
 0x23d   :  { %v3122_v1 = vunpack.i.h.bf16 %v4508_v8  ;;  %1830 = vmatprep.mubr.f32.mxu1 %v1575_v45  ;;  %2902 = vmatpush3.bf16.msra.mxu1 %v2899_v46  ;;  %v3111_v45 = vunpack.i.l.bf16 %v3110_v12  ;;  %v3121_v15 = vunpack.i.l.bf16 %v4508_v8 }
 0x23e   :  { %v1587_v60 = vsel %vm21_vm0, %v4248_v5, %v3112_v49  ;;  %v1576_v5 = vsel %vm21_vm0, %v4384_v24, %v3096_v43  ;;  %v3106_v49 = vunpack.i.l.bf16 %v4499_v22 }
 0x23f   :  { %v1604_v17 = vsel %vm21_vm0, %v4276_v6, %v3122_v1  ;;  %v4519_v36 = vpop.permute.xlu0 %3114  ;;  %1956 = vmatmul.mubr.f32.vlgmr.msra.gmra.mrb[48].mxu0 %v1587_v60 }
 0x240   :  { %v4521_v33 = vpop.permute.xlu1 %3124  ;;  %v3117_v23 = vunpack.i.h.bf16 %v4519_v36  ;;  %1831 = vmatmul.mubr.f32.gmra.mrb[40].mxu1 %v1559_v48  ;;  %1960 = vmatprep.mubr.f32.mxu0 %v1604_v17  ;;  %v1561_v17 = vsel %vm21_vm0, %v4294_v56, %v3102_v57 }
 0x241   :  { %v3127_v46 = vunpack.i.h.bf16 %v4521_v33  ;;  %1835 = vmatprep.mubr.f32.mxu1 %v1576_v5 }
 0x242   :  { %v1588_v6 = vsel %vm21_vm0, %v4274_v35, %v3117_v23 }
 0x243   :  { %v1605_v14 = vsel %vm21_vm0, %v4269_v51, %v3127_v46  ;;  %v4533_v62 = vpop.permute.xlu0 %3129  ;;  %1961 = vmatmul.mubr.f32.gmra.mrb[50].mxu0 %v1588_v6  ;;  %v1577_v51 = vsel %vm21_vm0, %v4396_v16, %v3101_v19  ;;  %v3116_v46 = vunpack.i.l.bf16 %v4519_v36  ;;  %v1562_v6 = vsel %vm21_vm0, %v4320_v30, %v3111_v45 }
 0x244   :  { %v4535_v40 = vpop.permute.xlu1 %3139  ;;  %v3132_v43 = vunpack.i.h.bf16 %v4533_v62  ;;  %1836 = vmatmul.mubr.f32.gmra.mrb[42].mxu1 %v1560_v20  ;;  %1965 = vmatprep.mubr.f32.mxu0 %v1605_v14  ;;  %v3126_v14 = vunpack.i.l.bf16 %v4521_v33 }
 0x245   :  { %v3142_v1 = vunpack.i.h.bf16 %v4535_v40  ;;  %1840 = vmatprep.mubr.f32.mxu1 %v1577_v51 }
 0x246   :  { %v1589_v35 = vsel %vm21_vm0, %v4278_v18, %v3132_v43  ;;  %v1578_v18 = vsel %vm21_vm0, %v4410_v2, %v3106_v49  ;;  %v3131_v43 = vunpack.i.l.bf16 %v4533_v62 }
 0x247   :  { %v1606_v44 = vsel %vm21_vm0, %v4301_v52, %v3142_v1  ;;  %v4548_v60 = vpop.permute.xlu0 %3134  ;;  %1966 = vmatmul.mubr.f32.gmra.mrb[52].mxu0 %v1589_v35  ;;  %v1195_v52 = vld [vmem:[#allocation2 + $0xa2] sm:$0xff]  ;;  %v3141_v35 = vunpack.i.l.bf16 %v4535_v40 }
 0x248   :  { %v4550_v22 = vpop.permute.xlu1 %3144  ;;  %v3137_v48 = vunpack.i.h.bf16 %v4548_v60  ;;  %1841 = vmatmul.mubr.f32.gmra.mrb[44].mxu1 %v1561_v17  ;;  %1970 = vmatprep.mubr.f32.mxu0 %v1606_v44  ;;  %v3136_v17 = vunpack.i.l.bf16 %v4548_v60  ;;  %v1564_v40 = vsel %vm21_vm0, %v4336_v37, %v3131_v43 }
 0x249   :  { %v3147_v19 = vunpack.i.h.bf16 %v4550_v22  ;;  %1845 = vmatprep.mubr.f32.mxu1 %v1578_v18  ;;  %v3146_v18 = vunpack.i.l.bf16 %v4550_v22 }
 0x24a   :  { %v1590_v12 = vsel %vm21_vm0, %v4299_v53, %v3137_v48  ;;  %v1163_v53 = vld [vmem:[#allocation2 + $0xa0] sm:$0xff]  ;;  %v1565_v22 = vsel %vm21_vm0, %v4345_v26, %v3136_v17 }
 0x24b   :  { %v1607_v23 = vsel %vm21_vm0, %v4294_v56, %v3147_v19  ;;  %v4564_v8 = vpop.permute.xlu0 %3149  ;;  %1971 = vmatmul.mubr.f32.gmra.mrb[54].mxu0 %v1590_v12  ;;  %v1579_v56 = vsel %vm21_vm0, %v1195_v52, %v3121_v15  ;;  %v1563_v51 = vsel %vm21_vm0, %v1163_v53, %v3116_v46  ;;  %v1258_v19 = vld [vmem:[#allocation2 + $0x90] sm:$0xff] }
 0x24c   :  { %v4566_v5 = vpop.permute.xlu1 %3159  ;;  %v3152_v57 = vunpack.i.h.bf16 %v4564_v8  ;;  %1846 = vmatmul.mubr.f32.gmra.mrb[46].mxu1 %v1562_v6  ;;  %1975 = vmatprep.mubr.f32.mxu0 %v1607_v23  ;;  %v3151_v12 = vunpack.i.l.bf16 %v4564_v8 }
 0x24d   :  { %v3162_v20 = vunpack.i.h.bf16 %v4566_v5  ;;  %1850 = vmatprep.mubr.f32.mxu1 %v1579_v56  ;;  %v3161_v46 = vunpack.i.l.bf16 %v4566_v5 }
 0x24e   :  { %v1591_v36 = vsel %vm21_vm0, %v4303_v63, %v3152_v57  ;;  %v1580_v63 = vsel %vm21_vm0, %v4431_v11, %v3126_v14  ;;  %v1566_v5 = vsel %vm21_vm0, %v4355_v55, %v3151_v12 }
 0x24f   :  { %v1608_v49 = vsel %vm21_vm0, %v4320_v30, %v3162_v20  ;;  %v3155_v1 = vpop.permute.xlu0 %3154  ;;  %1976 = vmatmul.mubr.f32.gmra.mrb[56].mxu0 %v1591_v36 }
 0x250   :  { %v4579_v33 = vpop.permute.xlu1 %3164  ;;  %v3157_v44 = vunpack.i.h.bf16 %v3155_v1  ;;  %1851 = vmatmul.mubr.f32.gmra.mrb[48].mxu1 %v1563_v51  ;;  %1980 = vmatprep.mubr.f32.mxu0 %v1608_v49  ;;  %v3156_v20 = vunpack.i.l.bf16 %v3155_v1  ;;  %v1583_v51 = vsel %vm21_vm0, %v4443_v21, %v3161_v46 }
 0x251   :  { %v3167_v45 = vunpack.i.h.bf16 %v4579_v33  ;;  %1855 = vmatprep.mubr.f32.mxu1 %v1580_v63  ;;  %v3166_v36 = vunpack.i.l.bf16 %v4579_v33 }
 0x252   :  { %v1592_v30 = vsel %vm21_vm0, %v4318_v9, %v3157_v44  ;;  %v1567_v33 = vsel %vm21_vm0, %v4368_v34, %v3156_v20 }
 0x253   :  { %v1609_v62 = vsel %vm21_vm0, %v4313_v3, %v3167_v45  ;;  %v3170_v15 = vpop.permute.xlu0 %3169  ;;  %1981 = vmatmul.mubr.f32.gmra.mrb[58].mxu0 %v1592_v30  ;;  %v1581_v3 = vsel %vm21_vm0, %v4433_v59, %v3141_v35 }
 0x254   :  { %v4591_v48 = vpop.permute.xlu1 %3179  ;;  %v3172_v11 = vunpack.i.h.bf16 %v3170_v15  ;;  %1856 = vmatmul.mubr.f32.gmra.mrb[50].mxu1 %v1564_v40  ;;  %1985 = vmatprep.mubr.f32.mxu0 %v1609_v62  ;;  %v3171_v35 = vunpack.i.l.bf16 %v3170_v15  ;;  %v1584_v62 = vsel %vm21_vm0, %v4449_v7, %v3166_v36 }
 0x255   :  { %v3182_v52 = vunpack.i.h.bf16 %v4591_v48  ;;  %1860 = vmatprep.mubr.f32.mxu1 %v1581_v3  ;;  %v3181_v45 = vunpack.i.l.bf16 %v4591_v48 }
 0x256   :  { %v1593_v9 = vsel %vm21_vm0, %v4327_v29, %v3172_v11  ;;  %v1582_v29 = vsel %vm21_vm0, %v4439_v28, %v3146_v18  ;;  %v1568_v48 = vsel %vm21_vm0, %v4380_v27, %v3171_v35 }
 0x257   :  { %v1610_v60 = vsel %vm21_vm0, %v1258_v19, %v3182_v52  ;;  %v3175_v37 = vpop.permute.xlu0 %3174  ;;  %1986 = vmatmul.mubr.f32.gmra.mrb[60].mxu0 %v1593_v9  ;;  %v1585_v11 = vsel %vm21_vm0, %v4453_v10, %v3181_v45 }
 0x258   :  { %v4603_v23 = vpop.permute.xlu1 %3184  ;;  %v3177_v6 = vunpack.i.h.bf16 %v3175_v37  ;;  %1861 = vmatmul.mubr.f32.gmra.mrb[52].mxu1 %v1565_v22  ;;  %1990 = vmatprep.mubr.f32.mxu0 %v1610_v60  ;;  %v3176_v15 = vunpack.i.l.bf16 %v3175_v37 }
 0x259   :  { %v3187_v14 = vunpack.i.h.bf16 %v4603_v23  ;;  %1865 = vmatprep.mubr.f32.mxu1 %v1582_v29  ;;  %v3186_v19 = vunpack.i.l.bf16 %v4603_v23 }
 0x25a   :  { %v1594_v8 = vsel %vm21_vm0, %v4398_v25, %v3177_v6  ;;  %v1569_v9 = vsel %vm21_vm0, %v4392_v47, %v3176_v15 }
 0x25b   :  { %v1611_v57 = vsel %vm21_vm0, %v4345_v26, %v3187_v14  ;;  %v3190_v56 = vpop.permute.xlu0 %3189  ;;  %1991 = vmatmul.mubr.f32.gmra.mrb[62].mxu0 %v1594_v8  ;;  %v1586_v37 = vsel %vm21_vm0, %v4465_v54, %v3186_v19 }
 0x25c   :  { %v3195_v53 = vpop.permute.xlu1 %3194  ;;  %v3192_v49 = vunpack.i.h.bf16 %v3190_v56  ;;  %1866 = vmatmul.mubr.f32.gmra.mrb[54].mxu1 %v1566_v5  ;;  %1995 = vmatprep.mubr.f32.mxu0 %v1611_v57 }
 0x25d   :  { %v3196_v43 = vunpack.i.l.bf16 %v3195_v53  ;;  %1870 = vmatprep.mubr.f32.mxu1 %v1583_v51  ;;  %v3197_v25 = vunpack.i.h.bf16 %v3195_v53 }
 0x25e   :  { %v1595_v26 = vsel %vm21_vm0, %v4353_v13, %v3192_v49 }
 0x25f   :  { %v1612_v1 = vsel %vm21_vm0, %v4355_v55, %v3196_v43  ;;  %v3200_v44 = vpop.permute.xlu0 %3199  ;;  %1996 = vmatmul.mubr.f32.gmra.mrb[64].mxu0 %v1595_v26  ;;  %v1596_v55 = vsel %vm21_vm0, %v4366_v61, %v3197_v25 }
 0x260   :  { %v3201_v63 = vunpack.i.l.bf16 %v3200_v44  ;;  %v3205_v30 = vpop.permute.xlu1 %3204  ;;  %1871 = vmatmul.mubr.f32.gmra.mrb[56].mxu1 %v1567_v33  ;;  %2000 = vmatprep.mubr.f32.mxu0 %v1612_v1  ;;  %v3202_v13 = vunpack.i.h.bf16 %v3200_v44 }
 0x261   :  { %1875 = vmatprep.mubr.f32.mxu1 %v1584_v62  ;;  %v3206_v40 = vunpack.i.l.bf16 %v3205_v30  ;;  %v3207_v52 = vunpack.i.h.bf16 %v3205_v30 }
 0x262   :  { %v1613_v17 = vsel %vm21_vm0, %v4368_v34, %v3201_v63  ;;  %v1597_v61 = vsel %vm21_vm0, %v4378_v58, %v3202_v13  ;;  %v3191_v34 = vunpack.i.l.bf16 %v3190_v56  ;;  %v1290_v56 = vld [vmem:[#allocation2 + $0x92] sm:$0xff] }
 0x263   :  { %2001 = vmatmul.mubr.f32.gmra.mrb[66].mxu0 %v1596_v55  ;;  %v3210_v18 = vpop.permute.xlu0 %3209  ;;  %v1614_v60 = vsel %vm21_vm0, %v4380_v27, %v3206_v40  ;;  %v1598_v58 = vsel %vm21_vm0, %v4390_v0, %v3207_v52 }
 0x264   :  { %1876 = vmatmul.mubr.f32.gmra.mrb[58].mxu1 %v1568_v48  ;;  %2005 = vmatprep.mubr.f32.mxu0 %v1613_v17  ;;  %v3211_v3 = vunpack.i.l.bf16 %v3210_v18  ;;  %v3215_v12 = vpop.permute.xlu1 %3214  ;;  %v3212_v23 = vunpack.i.h.bf16 %v3210_v18  ;;  %v1570_v46 = vsel %vm21_vm0, %v4406_v41, %v3191_v34 }
 0x265   :  { %1880 = vmatprep.mubr.f32.mxu1 %v1585_v11  ;;  %v3216_v22 = vunpack.i.l.bf16 %v3215_v12  ;;  %v3217_v14 = vunpack.i.h.bf16 %v3215_v12 }
 0x266   :  { %v1615_v6 = vsel %vm21_vm0, %v4392_v47, %v3211_v3  ;;  %v1599_v29 = vsel %vm21_vm0, %v4404_v50, %v3212_v23 }
 0x267   :  { %2006 = vmatmul.mubr.f32.gmra.mrb[68].mxu0 %v1597_v61  ;;  %v3220_v27 = vpop.permute.xlu0 %3219  ;;  %v1616_v0 = vsel %vm21_vm0, %v4406_v41, %v3216_v22  ;;  %v1266_v41 = vld [vmem:[#allocation2 + $0x130] sm:$0xff] }
 0x268   :  { %1881 = vmatmul.mubr.f32.gmra.mrb[60].mxu1 %v1569_v9  ;;  %2010 = vmatprep.mubr.f32.mxu0 %v1614_v60  ;;  %v3221_v8 = vunpack.i.l.bf16 %v3220_v27  ;;  %v3225_v57 = vpop.permute.xlu1 %3224  ;;  %v3222_v47 = vunpack.i.h.bf16 %v3220_v27 }
 0x269   :  { %1885 = vmatprep.mubr.f32.mxu1 %v1586_v37  ;;  %v3226_v20 = vunpack.i.l.bf16 %v3225_v57 }
 0x26a   :  { %v1617_v50 = vsel %vm21_vm0, %v4417_v4, %v3221_v8  ;;  %v4813_v4 = vld [vmem:[#allocation6_spill] sm:$0xff] }
 0x26b   :  { %2011 = vmatmul.mubr.f32.gmra.mrb[70].mxu0 %v1598_v58 }
 0x26c   :  { %1886 = vmatmul.mubr.f32.gmra.mrb[62].mxu1 %v1570_v46  ;;  %2015 = vmatprep.mubr.f32.mxu0 %v1615_v6 }
 0x26d   :  { %2719 = vmatprep.mubr.msk.f32.mxu1 %vm21_vm0, %v4343_v39  ;;  %v1600_v39 = vsel %vm21_vm0, %v4415_v32, %v3217_v14  ;;  %v1618_v32 = vsel %vm21_vm0, %v1266_v41, %v3226_v20 }
 0x26f   :  { %2016 = vmatmul.mubr.f32.gmra.mrb[72].mxu0 %v1599_v29 }
 0x270   :  { %2020 = vmatprep.mubr.f32.mxu0 %v1616_v0  ;;  %2720 = vmatmul.mubr.msk.f32.vlgmr.msra.gmra.mrb[64].mxu1 %vm21_vm0, %v4360_v31  ;;  %v3227_v31 = vunpack.i.h.bf16 %v3225_v57 }
 0x271   :  { %2722 = vmatprep.mubr.msk.f32.mxu1 %vm21_vm0, %v4372_v42  ;;  %v1601_v42 = vsel %vm21_vm0, %v4427_v38, %v3222_v47 }
 0x273   :  { %2021 = vmatmul.mubr.f32.gmra.mrb[74].mxu0 %v1600_v39 }
 0x274   :  { %2025 = vmatprep.mubr.f32.mxu0 %v1617_v50  ;;  %2723 = vmatmul.mubr.msk.f32.gmra.mrb[66].mxu1 %vm21_vm0, %v4384_v24  ;;  %v4814_v24 = vld [vmem:[#allocation7_spill] sm:$0xff] }
 0x275   :  { %2725 = vmatprep.mubr.msk.f32.mxu1 %vm21_vm0, %v4396_v16  ;;  %v1602_v53 = vsel %vm21_vm0, %v4814_v24, %v3227_v31  ;;  %v4815_v16 = vld [vmem:[#allocation8_spill] sm:$0xff] }
 0x277   :  { %2026 = vmatmul.mubr.f32.gmra.mrb[76].mxu0 %v1601_v42 }
 0x278   :  { %2030 = vmatprep.mubr.f32.mxu0 %v1618_v32  ;;  %2726 = vmatmul.mubr.msk.f32.gmra.mrb[68].mxu1 %vm21_vm0, %v4410_v2  ;;  %v1298_v2 = vld [vmem:[#allocation2 + $0x132] sm:$0xff] }
 0x279   :  { %2728 = vmatprep.mubr.msk.f32.mxu1 %vm21_vm0, %v4813_v4 }
 0x27b   :  { %2031 = vmatmul.mubr.f32.gmra.mrb[78].mxu0 %v1602_v53 }
 0x27c   :  { %2729 = vmatmul.mubr.msk.f32.gmra.mrb[70].mxu1 %vm21_vm0, %v1290_v56 }
 0x27d   :  { %2731 = vmatprep.mubr.msk.f32.mxu1 %vm21_vm0, %v4433_v59 }
 0x280   :  { %2732 = vmatmul.mubr.msk.f32.gmra.mrb[72].mxu1 %vm21_vm0, %v4439_v28 }
 0x281   :  { %2734 = vmatprep.mubr.msk.f32.mxu1 %vm21_vm0, %v4443_v21 }
 0x284   :  { %2735 = vmatmul.mubr.msk.f32.gmra.mrb[74].mxu1 %vm21_vm0, %v4449_v7 }
 0x285   :  { %2737 = vmatprep.mubr.msk.f32.mxu1 %vm21_vm0, %v4453_v10 }
 0x288   :  { %2738 = vmatmul.mubr.msk.f32.gmra.mrb[76].mxu1 %vm21_vm0, %v4465_v54  ;;  %v4698_v54 = vld [vmem:[%s4793_s4] ss:$0 sm:$0xff]  ;;  %s3254_s4 = smov [#allocation3]  }
 0x289   :  { %2740 = vmatprep.mubr.msk.f32.mxu1 %vm21_vm0, %v4815_v16  ;;  %s2250_s6 = sshll.u32 %s3254_s4, 4  ;;  %s2251_s6 = int_to_ptr.vmem [resolvable:$true] %s2250_s6 }
 0x28a   :  { %s3228_s7 = scalar_lea.vmem %s2251_s6, 2048  ;;  %p3233_p1 = scmp.lt.s32.totalorder %s2251_s6, %s2251_s6 }
 0x28b   :  { %p3229_p0 = scmp.ne.s32.totalorder %s2251_s6, %s3228_s7  ;;  %p3234_p2 = scmp.lt.s32.totalorder %s3228_s7, %s3228_s7 }
 0x28c   :  { %2741 = vmatmul.mubr.msk.f32.gmra.mrb[78].mxu1 %vm21_vm0, %v1298_v2 }
 0x28d   :  { %p3235_p3 = por %p3234_p2, %p3233_p1 }
 0x28f   :  { %p3236_p4 = pnand %p3235_p3, %p3229_p0 }
 0x303   :  { %v2511_v38 = vpop.f32.mrb[32].mxu1 }
 0x304   :  { %v2512_v59 = vpop.f32.mrb[33].mxu1 }
 0x305   :  { %v2513_v28 = vadd.f32 %v2512_v59, %v2511_v38 }
 0x307   :  { %v2514_v5 = vpop.f32.mrb[34].mxu1  ;;  %v1813_v44 = vadd.f32 %v2513_v28, %v4698_v54 }
 0x308   :  { %v2515_v21 = vpop.f32.mrb[35].mxu1 }
 0x309   :  { %v2516_v36 = vadd.f32 %v2515_v21, %v2514_v5 }
 0x30b   :  { %v2517_v49 = vpop.f32.mrb[36].mxu1  ;;  %v1818_v17 = vadd.f32 %v2516_v36, %v4698_v54 }
 0x30c   :  { %v2518_v7 = vpop.f32.mrb[37].mxu1 }
 0x30d   :  { %v2519_v43 = vadd.f32 %v2518_v7, %v2517_v49 }
 0x30f   :  { %v2520_v51 = vpop.f32.mrb[38].mxu1  ;;  %v1823_v61 = vadd.f32 %v2519_v43, %v4698_v54 }
 0x310   :  { %v2521_v10 = vpop.f32.mrb[39].mxu1 }
 0x311   :  { %v2522_v25 = vadd.f32 %v2521_v10, %v2520_v51 }
 0x312   :  { %v2591_v26 = vpop.f32.mrb[48].mxu0 }
 0x313   :  { %v2523_v1 = vpop.f32.mrb[40].mxu1  ;;  %v2592_v35 = vpop.f32.mrb[49].mxu0  ;;  %v1828_v58 = vadd.f32 %v2522_v25, %v4698_v54 }
 0x314   :  { %v2593_v33 = vadd.f32 %v2592_v35, %v2591_v26  ;;  %v2524_v45 = vpop.f32.mrb[41].mxu1 }
 0x315   :  { %v2525_v63 = vadd.f32 %v2524_v45, %v2523_v1 }
 0x316   :  { %v2594_v30 = vpop.f32.mrb[50].mxu0  ;;  %v4701_v62 = vadd.f32 %v2593_v33, %v1813_v44 }
 0x317   :  { %v2526_v13 = vpop.f32.mrb[42].mxu1  ;;  %v2595_v55 = vpop.f32.mrb[51].mxu0  ;;  %v1833_v0 = vadd.f32 %v2525_v63, %v4698_v54 }
 0x318   :  { %v2596_v15 = vadd.f32 %v2595_v55, %v2594_v30  ;;  %v2527_v40 = vpop.f32.mrb[43].mxu1 }
 0x319   :  { %v2528_v48 = vadd.f32 %v2527_v40, %v2526_v13 }
 0x31a   :  { %v2597_v19 = vpop.f32.mrb[52].mxu0  ;;  %v4704_v18 = vadd.f32 %v2596_v15, %v1818_v17 }
 0x31b   :  { %v2529_v11 = vpop.f32.mrb[44].mxu1  ;;  %v2598_v52 = vpop.f32.mrb[53].mxu0  ;;  %v1838_v42 = vadd.f32 %v2528_v48, %v4698_v54 }
 0x31c   :  { %v2599_v34 = vadd.f32 %v2598_v52, %v2597_v19  ;;  %v2530_v3 = vpop.f32.mrb[45].mxu1 }
 0x31d   :  { %v2531_v9 = vadd.f32 %v2530_v3, %v2529_v11 }
 0x31e   :  { %v2600_v60 = vpop.f32.mrb[54].mxu0  ;;  %v4707_v12 = vadd.f32 %v2599_v34, %v1823_v61 }
 0x31f   :  { %v2532_v37 = vpop.f32.mrb[46].mxu1  ;;  %v2601_v23 = vpop.f32.mrb[55].mxu0  ;;  %v1843_v38 = vadd.f32 %v2531_v9, %v4698_v54 }
 0x320   :  { %v2602_v22 = vadd.f32 %v2601_v23, %v2600_v60  ;;  %v2533_v46 = vpop.f32.mrb[47].mxu1 }
 0x321   :  { %v2534_v6 = vadd.f32 %v2533_v46, %v2532_v37 }
 0x322   :  { %v2603_v27 = vpop.f32.mrb[56].mxu0  ;;  %v4710_v14 = vadd.f32 %v2602_v22, %v1828_v58 }
 0x323   :  { %v2535_v29 = vpop.f32.mrb[48].mxu1  ;;  %v2604_v8 = vpop.f32.mrb[57].mxu0  ;;  %v1848_v43 = vadd.f32 %v2534_v6, %v4698_v54 }
 0x324   :  { %v2605_v57 = vadd.f32 %v2604_v8, %v2603_v27  ;;  %v2536_v47 = vpop.f32.mrb[49].mxu1 }
 0x325   :  { %v2537_v39 = vadd.f32 %v2536_v47, %v2535_v29 }
 0x326   :  { %v2606_v20 = vpop.f32.mrb[58].mxu0  ;;  %v4713_v50 = vadd.f32 %v2605_v57, %v1833_v0 }
 0x327   :  { %v2538_v41 = vpop.f32.mrb[50].mxu1  ;;  %v2607_v31 = vpop.f32.mrb[59].mxu0  ;;  %v1853_v33 = vadd.f32 %v2537_v39, %v4698_v54 }
 0x328   :  { %v2608_v32 = vadd.f32 %v2607_v31, %v2606_v20  ;;  %v2539_v4 = vpop.f32.mrb[51].mxu1 }
 0x329   :  { %v2540_v56 = vadd.f32 %v2539_v4, %v2538_v41 }
 0x32a   :  { %v2609_v24 = vpop.f32.mrb[60].mxu0  ;;  %v4716_v53 = vadd.f32 %v2608_v32, %v1838_v42 }
 0x32b   :  { %v2541_v16 = vpop.f32.mrb[52].mxu1  ;;  %v2610_v2 = vpop.f32.mrb[61].mxu0  ;;  %v1858_v40 = vadd.f32 %v2540_v56, %v4698_v54 }
 0x32c   :  { %v2611_v59 = vadd.f32 %v2610_v2, %v2609_v24  ;;  %v2542_v28 = vpop.f32.mrb[53].mxu1 }
 0x32d   :  { %v2543_v5 = vadd.f32 %v2542_v28, %v2541_v16 }
 0x32e   :  { %v2612_v21 = vpop.f32.mrb[62].mxu0  ;;  %v4719_v36 = vadd.f32 %v2611_v59, %v1843_v38 }
 0x32f   :  { %v2544_v49 = vpop.f32.mrb[54].mxu1  ;;  %v2613_v7 = vpop.f32.mrb[63].mxu0  ;;  %v1863_v9 = vadd.f32 %v2543_v5, %v4698_v54 }
 0x330   :  { %v2614_v51 = vadd.f32 %v2613_v7, %v2612_v21  ;;  %v2545_v10 = vpop.f32.mrb[55].mxu1 }
 0x331   :  { %v2546_v25 = vadd.f32 %v2545_v10, %v2544_v49 }
 0x332   :  { %v2615_v26 = vpop.f32.mrb[64].mxu0  ;;  %v4722_v1 = vadd.f32 %v2614_v51, %v1848_v43 }
 0x333   :  { %v2547_v35 = vpop.f32.mrb[56].mxu1  ;;  %v2616_v44 = vpop.f32.mrb[65].mxu0  ;;  %v1868_v27 = vadd.f32 %v2546_v25, %v4698_v54 }
 0x334   :  { %v2617_v45 = vadd.f32 %v2616_v44, %v2615_v26  ;;  %v2548_v63 = vpop.f32.mrb[57].mxu1 }
 0x335   :  { %v2549_v30 = vadd.f32 %v2548_v63, %v2547_v35 }
 0x336   :  { %v2618_v13 = vpop.f32.mrb[66].mxu0  ;;  %v4725_v55 = vadd.f32 %v2617_v45, %v1853_v33 }
 0x337   :  { %v2550_v17 = vpop.f32.mrb[58].mxu1  ;;  %v2619_v15 = vpop.f32.mrb[67].mxu0  ;;  %v1873_v41 = vadd.f32 %v2549_v30, %v4698_v54 }
 0x338   :  { %v2620_v48 = vadd.f32 %v2619_v15, %v2618_v13  ;;  %v2551_v19 = vpop.f32.mrb[59].mxu1 }
 0x339   :  { %v2552_v11 = vadd.f32 %v2551_v19, %v2550_v17 }
 0x33a   :  { %v2621_v52 = vpop.f32.mrb[68].mxu0  ;;  %v4728_v61 = vadd.f32 %v2620_v48, %v1858_v40 }
 0x33b   :  { %v2553_v34 = vpop.f32.mrb[60].mxu1  ;;  %v2622_v3 = vpop.f32.mrb[69].mxu0  ;;  %v1878_v28 = vadd.f32 %v2552_v11, %v4698_v54 }
 0x33c   :  { %v2623_v60 = vadd.f32 %v2622_v3, %v2621_v52  ;;  %v2554_v37 = vpop.f32.mrb[61].mxu1 }
 0x33d   :  { %v2555_v23 = vadd.f32 %v2554_v37, %v2553_v34 }
 0x33e   :  { %v2624_v58 = vpop.f32.mrb[70].mxu0  ;;  %v4731_v22 = vadd.f32 %v2623_v60, %v1863_v9 }
 0x33f   :  { %v2556_v46 = vpop.f32.mrb[62].mxu1  ;;  %v2625_v6 = vpop.f32.mrb[71].mxu0  ;;  %v1883_v44 = vadd.f32 %v2555_v23, %v4698_v54 }
 0x340   :  { %v2626_v29 = vadd.f32 %v2625_v6, %v2624_v58  ;;  %v2557_v8 = vpop.f32.mrb[63].mxu1 }
 0x341   :  { %v2558_v0 = vadd.f32 %v2557_v8, %v2556_v46 }
 0x342   :  { %v2627_v57 = vpop.f32.mrb[72].mxu0  ;;  %v4734_v47 = vadd.f32 %v2626_v29, %v1868_v27 }
 0x343   :  { %v2628_v39 = vpop.f32.mrb[73].mxu0  ;;  %v2721_v20 = vpop.f32.mrb[64].mxu1  ;;  %v1888_v11 = vadd.f32 %v2558_v0, %v4698_v54 }
 0x344   :  { %v2629_v31 = vadd.f32 %v2628_v39, %v2627_v57  ;;  %v2108_v42 = vadd.f32 %v2721_v20, %v4704_v18  ;;  %v2102_v32 = vpop.f32.mrb[65].mxu1 }
 0x345   :  { %v2103_v4 = vadd.f32 %v2102_v32, %v4701_v62 }
 0x346   :  { %vm2182_vm2 = vcmp.ge.f32.partialorder %v2108_v42, 0.0  ;;  %v2198_v56 = vmul.f32 0.01, %v2108_v42  ;;  %v2630_v24 = vpop.f32.mrb[74].mxu0  ;;  %v4739_v16 = vadd.f32 %v2629_v31, %v1873_v41 }
 0x347   :  { %vm2181_vm3 = vcmp.ge.f32.partialorder %v2103_v4, 0.0  ;;  %v2197_v2 = vmul.f32 0.01, %v2103_v4  ;;  %v2631_v38 = vpop.f32.mrb[75].mxu0  ;;  %v2724_v59 = vpop.f32.mrb[66].mxu1 }
 0x348   :  { %v2214_v5 = vsel %vm2182_vm2, %v2108_v42, %v2198_v56  ;;  %v2632_v21 = vadd.f32 %v2631_v38, %v2630_v24  ;;  %v2118_v49 = vadd.f32 %v2724_v59, %v4710_v14  ;;  %v2112_v7 = vpop.f32.mrb[67].mxu1 }
 0x349   :  { %2230 = vst.msk [vmem:[#allocation3 + $0x8] sm:$0xff] %vm21_vm0, %v2214_v5  ;;  %v2213_v18 = vsel %vm2181_vm3, %v2103_v4, %v2197_v2  ;;  %v2113_v62 = vadd.f32 %v2112_v7, %v4707_v12 }
 0x34a   :  { %2229 = vst.msk [vmem:[#allocation3] sm:$0xff] %vm21_vm0, %v2213_v18  ;;  %vm2184_vm4 = vcmp.ge.f32.partialorder %v2118_v49, 0.0  ;;  %v2200_v43 = vmul.f32 0.01, %v2118_v49  ;;  %v2633_v51 = vpop.f32.mrb[76].mxu0  ;;  %v4746_v10 = vadd.f32 %v2632_v21, %v1878_v28 }
 0x34b   :  { %vm2183_vm5 = vcmp.ge.f32.partialorder %v2113_v62, 0.0  ;;  %v2199_v25 = vmul.f32 0.01, %v2113_v62  ;;  %v2634_v26 = vpop.f32.mrb[77].mxu0  ;;  %v2727_v35 = vpop.f32.mrb[68].mxu1 }
 0x34c   :  { %v2216_v14 = vsel %vm2184_vm4, %v2118_v49, %v2200_v43  ;;  %v2635_v33 = vadd.f32 %v2634_v26, %v2633_v51  ;;  %v2128_v45 = vadd.f32 %v2727_v35, %v4716_v53  ;;  %v2122_v63 = vpop.f32.mrb[69].mxu1 }
 0x34d   :  { %2232 = vst.msk [vmem:[#allocation3 + $0x18] sm:$0xff] %vm21_vm0, %v2216_v14  ;;  %v2215_v12 = vsel %vm2183_vm5, %v2113_v62, %v2199_v25  ;;  %v2123_v30 = vadd.f32 %v2122_v63, %v4713_v50 }
 0x34e   :  { %2231 = vst.msk [vmem:[#allocation3 + $0x10] sm:$0xff] %vm21_vm0, %v2215_v12  ;;  %vm2186_vm6 = vcmp.ge.f32.partialorder %v2128_v45, 0.0  ;;  %v2202_v13 = vmul.f32 0.01, %v2128_v45  ;;  %v2636_v17 = vpop.f32.mrb[78].mxu0  ;;  %v4753_v15 = vadd.f32 %v2635_v33, %v1883_v44 }
 0x34f   :  { %vm2185_vm7 = vcmp.ge.f32.partialorder %v2123_v30, 0.0  ;;  %v2201_v40 = vmul.f32 0.01, %v2123_v30  ;;  %v2637_v48 = vpop.f32.mrb[79].mxu0  ;;  %v2730_v19 = vpop.f32.mrb[70].mxu1 }
 0x350   :  { %v2218_v53 = vsel %vm2186_vm6, %v2128_v45, %v2202_v13  ;;  %v2638_v52 = vadd.f32 %v2637_v48, %v2636_v17  ;;  %v2138_v34 = vadd.f32 %v2730_v19, %v4722_v1  ;;  %v2132_v3 = vpop.f32.mrb[71].mxu1 }
 0x351   :  { %2234 = vst.msk [vmem:[#allocation3 + $0x28] sm:$0xff] %vm21_vm0, %v2218_v53  ;;  %v2217_v50 = vsel %vm2185_vm7, %v2123_v30, %v2201_v40  ;;  %v2133_v9 = vadd.f32 %v2132_v3, %v4719_v36 }
 0x352   :  { %2233 = vst.msk [vmem:[#allocation3 + $0x20] sm:$0xff] %vm21_vm0, %v2217_v50  ;;  %vm2188_vm8 = vcmp.ge.f32.partialorder %v2138_v34, 0.0  ;;  %v2204_v60 = vmul.f32 0.01, %v2138_v34  ;;  %v2033_v37 = vadd.f32 %v2638_v52, %v1888_v11 }
 0x353   :  { %vm2187_vm9 = vcmp.ge.f32.partialorder %v2133_v9, 0.0  ;;  %v2203_v23 = vmul.f32 0.01, %v2133_v9  ;;  %v2733_v58 = vpop.f32.mrb[72].mxu1 }
 0x354   :  { %v2220_v46 = vsel %vm2188_vm8, %v2138_v34, %v2204_v60  ;;  %v2148_v54 = vadd.f32 %v2733_v58, %v4728_v61  ;;  %v2142_v6 = vpop.f32.mrb[73].mxu1 }
 0x355   :  { %2236 = vst.msk [vmem:[#allocation3 + $0x38] sm:$0xff] %vm21_vm0, %v2220_v46  ;;  %v2219_v1 = vsel %vm2187_vm9, %v2133_v9, %v2203_v23  ;;  %v2143_v27 = vadd.f32 %v2142_v6, %v4725_v55 }
 0x356   :  { %2235 = vst.msk [vmem:[#allocation3 + $0x30] sm:$0xff] %vm21_vm0, %v2219_v1  ;;  %vm2190_vm10 = vcmp.ge.f32.partialorder %v2148_v54, 0.0  ;;  %v2206_v36 = vmul.f32 0.01, %v2148_v54 }
 0x357   :  { %vm2189_vm11 = vcmp.ge.f32.partialorder %v2143_v27, 0.0  ;;  %v2205_v29 = vmul.f32 0.01, %v2143_v27  ;;  %v2736_v8 = vpop.f32.mrb[74].mxu1 }
 0x358   :  { %v2222_v0 = vsel %vm2190_vm10, %v2148_v54, %v2206_v36  ;;  %v2158_v57 = vadd.f32 %v2736_v8, %v4734_v47  ;;  %v2152_v39 = vpop.f32.mrb[75].mxu1 }
 0x359   :  { %2238 = vst.msk [vmem:[#allocation3 + $0x48] sm:$0xff] %vm21_vm0, %v2222_v0  ;;  %v2221_v61 = vsel %vm2189_vm11, %v2143_v27, %v2205_v29  ;;  %v2153_v20 = vadd.f32 %v2152_v39, %v4731_v22 }
 0x35a   :  { %2237 = vst.msk [vmem:[#allocation3 + $0x40] sm:$0xff] %vm21_vm0, %v2221_v61  ;;  %vm2192_vm12 = vcmp.ge.f32.partialorder %v2158_v57, 0.0  ;;  %v2208_v55 = vmul.f32 0.01, %v2158_v57 }
 0x35b   :  { %vm2191_vm13 = vcmp.ge.f32.partialorder %v2153_v20, 0.0  ;;  %v2207_v41 = vmul.f32 0.01, %v2153_v20  ;;  %v2739_v31 = vpop.f32.mrb[76].mxu1 }
 0x35c   :  { %v2224_v42 = vsel %vm2192_vm12, %v2158_v57, %v2208_v55  ;;  %v2168_v32 = vadd.f32 %v2739_v31, %v4746_v10  ;;  %v2162_v4 = vpop.f32.mrb[77].mxu1 }
 0x35d   :  { %2240 = vst.msk [vmem:[#allocation3 + $0x58] sm:$0xff] %vm21_vm0, %v2224_v42  ;;  %v2223_v47 = vsel %vm2191_vm13, %v2153_v20, %v2207_v41  ;;  %v2163_v56 = vadd.f32 %v2162_v4, %v4739_v16 }
 0x35e   :  { %2239 = vst.msk [vmem:[#allocation3 + $0x50] sm:$0xff] %vm21_vm0, %v2223_v47  ;;  %vm2194_vm14 = vcmp.ge.f32.partialorder %v2168_v32, 0.0  ;;  %v2210_v22 = vmul.f32 0.01, %v2168_v32 }
 0x35f   :  { %vm2193_vm15 = vcmp.ge.f32.partialorder %v2163_v56, 0.0  ;;  %v2209_v24 = vmul.f32 0.01, %v2163_v56  ;;  %v2742_v2 = vpop.f32.mrb[78].mxu1 }
 0x360   :  { %v2226_v38 = vsel %vm2194_vm14, %v2168_v32, %v2210_v22  ;;  %v2178_v59 = vadd.f32 %v2742_v2, %v2033_v37  ;;  %v2172_v28 = vpop.f32.mrb[79].mxu1 }
 0x361   :  { %2242 = vst.msk [vmem:[#allocation3 + $0x68] sm:$0xff] %vm21_vm0, %v2226_v38  ;;  %v2225_v5 = vsel %vm2193_vm15, %v2163_v56, %v2209_v24  ;;  %v2173_v21 = vadd.f32 %v2172_v28, %v4753_v15 }
 0x362   :  { %2241 = vst.msk [vmem:[#allocation3 + $0x60] sm:$0xff] %vm21_vm0, %v2225_v5  ;;  %vm2196_vm1 = vcmp.ge.f32.partialorder %v2178_v59, 0.0  ;;  %v2212_v16 = vmul.f32 0.01, %v2178_v59 }
 0x363   :  { %vm2195_vm2 = vcmp.ge.f32.partialorder %v2173_v21, 0.0  ;;  %v2211_v49 = vmul.f32 0.01, %v2173_v21 }
 0x364   :  { %v2228_v7 = vsel %vm2196_vm1, %v2178_v59, %v2212_v16 }
 0x365   :  { %2244 = vst.msk [vmem:[#allocation3 + $0x78] sm:$0xff] %vm21_vm0, %v2228_v7  ;;  %v2227_v18 = vsel %vm2195_vm2, %v2173_v21, %v2211_v49 }
 0x366   :  { %2243 = vst.msk [vmem:[#allocation3 + $0x70] sm:$0xff] %vm21_vm0, %v2227_v18 }
 0x367   :  { %3239 = shalt.err (!%p3236_p4)
}
 0x368   :  { %s3240_s9 = scalar_lea.hbm %s4794_s5, 2048 }
 0x369   :  { %p3241_p5 = scmp.ne.s32.totalorder %s4794_s5, %s3240_s9  ;;  %p3244_p6 = scmp.lt.u32.totalorder %s3240_s9, %s4794_s5 }
 0x36b   :  { %p3246_p7 = pnand %p3244_p6, %p3241_p5 }
 0x36d   :  { %3249 = shalt.err (!%p3246_p7)
}
 0x36e   :  { %s3255_s15 = smov 128   ;;  %s3256_s16 = smov 8  }
 0x36f   :  { %2256 = dma.vmem_to_hbm [thread:$0]  %s2251_s6, 2048, %s4794_s5, [#allocation4], %s3255_s15, %s3255_s15, %s3256_s16  }
 0x370   :  { %3250 = dma.done.wait [#allocation4], 2048  }
 0x371   :  { %3251 = vsyncadd [#allocation4], 4294965248 }
 0x372   :  { %2260 = vsyncpa [#allocation4], 1 }

</bundles_post_ra>
